<compile_context>
chip_gen: v7x
topology: tpu7x:2x2x1
jax: 0.10.0
libtpu: 0.0.40
codegen_flags: <defaults>
</compile_context>

<pallas_src>
from functools import partial

import numpy as np
import jax
import jax.numpy as jnp
from jax.experimental import pallas as pl
from jax.experimental.pallas import tpu as pltpu


# ------------------------------------------------------------ fused LSTM+head
def make_fused_kernel(T, Ta, Tb, B, Bp, L, H):
    """Fully-unrolled multi-layer LSTM over a combined (a|b) batch + MLP head.

    Layout of the combined batch (BT = 2*Bp rows, Bp = B rounded up to 8):
      rows [0,  B)        : 'a' sequences
      rows [Bp, Bp + B)   : 'b' sequences
      remaining rows      : zero padding (computed but ignored)
    """
    BT = 2 * Bp

    def kernel(x_ref, wih_ref, whh_ref, b_ref,
               w1a_ref, w1b_ref, b1_ref, w2_ref, b2_ref,
               out_ref, hs_scr):
        src = x_ref[...]                                   # [T*BT, H]
        for l in range(L):
            wih = wih_ref[l]                               # [H, 4H]
            whh = whh_ref[l]                               # [H, 4H]
            bias = b_ref[l]                                # [1, 4H]

            # Hoisted input projection for the whole layer: one MXU matmul.
            gx = jnp.dot(src, wih, preferred_element_type=jnp.float32) + bias

            h = jnp.zeros((BT, H), jnp.float32)
            c = jnp.zeros((BT, H), jnp.float32)
            c_a = c
            c_b = c

            for t in range(T):                             # fully unrolled
                gates = (gx[t * BT:(t + 1) * BT, :]
                         + jnp.dot(h, whh, preferred_element_type=jnp.float32))
                i_g = jax.nn.sigmoid(gates[:, 0 * H:1 * H])
                f_g = jax.nn.sigmoid(gates[:, 1 * H:2 * H])
                g_g = jnp.tanh(gates[:, 2 * H:3 * H])
                o_g = jax.nn.sigmoid(gates[:, 3 * H:4 * H])

                c = f_g * c + i_g * g_g
                h = o_g * jnp.tanh(c)

                if l + 1 < L:                              # feed next layer
                    hs_scr[t * BT:(t + 1) * BT, :] = h
                if t == Ta - 1:                            # a-half final cell
                    c_a = c
                if t == Tb - 1:                            # b-half final cell
                    c_b = c

            # MLP head for this layer's (c_a, c_b):
            #   relu(cat(c_a, c_b) @ W1 + b1) @ W2 + b2, with W1 split so no
            #   lane-dimension concatenation is required in-kernel.
            ca = c_a[0:B, :]                               # [B, H]
            cb = c_b[Bp:Bp + B, :]                         # [B, H]
            hid = (jnp.dot(ca, w1a_ref[...], preferred_element_type=jnp.float32)
                   + jnp.dot(cb, w1b_ref[...], preferred_element_type=jnp.float32)
                   + b1_ref[...])
            hid = jnp.maximum(hid, 0.0)
            out_ref[l] = (jnp.dot(hid, w2_ref[...],
                                  preferred_element_type=jnp.float32)
                          + b2_ref[...]).astype(out_ref.dtype)

            if l + 1 < L:
                src = hs_scr[...]                          # next layer's input

    return kernel


def run_fused(x_flat, wih_all, whh_all, bias_all,
              w1a_t, w1b_t, b1, w2_t, b2,
              *, T, Ta, Tb, B, Bp, hidden_dim, num_classes):
    L, H, G = wih_all.shape
    assert H == hidden_dim and G == 4 * hidden_dim
    BT = 2 * Bp
    kernel = make_fused_kernel(T, Ta, Tb, B, Bp, L, H)

    return pl.pallas_call(
        kernel,
        out_shape=jax.ShapeDtypeStruct((L, B, num_classes), jnp.float32),
        grid=(1,),
        in_specs=[
            pl.BlockSpec((T * BT, H), lambda i: (0, 0)),          # x (flattened)
            pl.BlockSpec((L, H, G), lambda i: (0, 0, 0)),         # W_ih^T stacked
            pl.BlockSpec((L, H, G), lambda i: (0, 0, 0)),         # W_hh^T stacked
            pl.BlockSpec((L, 1, G), lambda i: (0, 0, 0)),         # b_ih + b_hh
            pl.BlockSpec((H, H), lambda i: (0, 0)),               # W1^T (a half)
            pl.BlockSpec((H, H), lambda i: (0, 0)),               # W1^T (b half)
            pl.BlockSpec((1, H), lambda i: (0, 0)),               # b1
            pl.BlockSpec((H, num_classes), lambda i: (0, 0)),     # W2^T
            pl.BlockSpec((1, num_classes), lambda i: (0, 0)),     # b2
        ],
        out_specs=pl.BlockSpec((L, B, num_classes), lambda i: (0, 0, 0)),
        scratch_shapes=[pltpu.VMEM((T * BT, H), jnp.float32)],
        compiler_params=pltpu.CompilerParams(
            dimension_semantics=("arbitrary",)),
    )(x_flat, wih_all, whh_all, bias_all, w1a_t, w1b_t, b1, w2_t, b2)


# ------------------------------------------------------------------ glue
def pad_batch(seqs, T):
    """pad_sequence(batch_first=True) semantics, padded to length T, pad id 0."""
    arr = np.zeros((len(seqs), T), dtype=np.int32)
    for i, s in enumerate(seqs):
        arr[i, :len(s)] = np.asarray(s, dtype=np.int32)
    return jnp.asarray(arr)


def init_params(key, vocab_size, hidden_dim, num_layers, num_classes):
    n_keys = 1 + 4 * num_layers + 4
    keys = jax.random.split(key, n_keys)
    p = {}
    # nn.Embedding: N(0, 1)
    p["emb"] = jax.random.normal(keys[0], (vocab_size, hidden_dim), jnp.float32)
    # nn.LSTM: U(-1/sqrt(H), 1/sqrt(H)), gate order (i, f, g, o)
    k = 1.0 / np.sqrt(hidden_dim)
    lstm = []
    for l in range(num_layers):
        kk = keys[1 + 4 * l: 1 + 4 * l + 4]
        w_ih = jax.random.uniform(kk[0], (4 * hidden_dim, hidden_dim), jnp.float32, -k, k)
        w_hh = jax.random.uniform(kk[1], (4 * hidden_dim, hidden_dim), jnp.float32, -k, k)
        b_ih = jax.random.uniform(kk[2], (4 * hidden_dim,), jnp.float32, -k, k)
        b_hh = jax.random.uniform(kk[3], (4 * hidden_dim,), jnp.float32, -k, k)
        lstm.append((w_ih, w_hh, b_ih, b_hh))
    p["lstm"] = lstm
    # int_layer: Linear(2H -> H), out_layer: Linear(H -> C)
    k1 = 1.0 / np.sqrt(2 * hidden_dim)
    k2 = 1.0 / np.sqrt(hidden_dim)
    base = 1 + 4 * num_layers
    p["int_w"] = jax.random.uniform(keys[base + 0], (hidden_dim, 2 * hidden_dim),
                                    jnp.float32, -k1, k1)
    p["int_b"] = jax.random.uniform(keys[base + 1], (hidden_dim,), jnp.float32, -k1, k1)
    p["out_w"] = jax.random.uniform(keys[base + 2], (num_classes, hidden_dim),
                                    jnp.float32, -k2, k2)
    p["out_b"] = jax.random.uniform(keys[base + 3], (num_classes,), jnp.float32, -k2, k2)
    return p


@partial(jax.jit, static_argnames=("Ta", "Tb", "hidden_dim", "num_classes"))
def _forward(params, a_tok, b_tok, Ta, Tb, hidden_dim, num_classes):
    H = hidden_dim
    B, T = a_tok.shape
    Bp = ((B + 7) // 8) * 8                 # pad each half to a sublane multiple
    BT = 2 * Bp

    a_emb = jnp.take(params["emb"], a_tok, axis=0)        # [B, T, H]
    b_emb = jnp.take(params["emb"], b_tok, axis=0)        # [B, T, H]

    # Combined, time-major, sublane-padded activation slab.
    x = jnp.zeros((T, BT, H), jnp.float32)
    x = x.at[:, 0:B].set(jnp.transpose(a_emb, (1, 0, 2)))
    x = x.at[:, Bp:Bp + B].set(jnp.transpose(b_emb, (1, 0, 2)))
    x_flat = x.reshape(T * BT, H)

    # Stacked, pre-transposed LSTM weights (PyTorch (i,f,g,o) gate order).
    wih_all = jnp.stack([w_ih.T for (w_ih, _, _, _) in params["lstm"]])     # [L,H,4H]
    whh_all = jnp.stack([w_hh.T for (_, w_hh, _, _) in params["lstm"]])     # [L,H,4H]
    bias_all = jnp.stack([(b_ih + b_hh).reshape(1, -1)
                          for (_, _, b_ih, b_hh) in params["lstm"]])        # [L,1,4H]

    # Head weights; W1 split along its 2H input dim (c_a half / c_b half).
    w1_t = params["int_w"].T                               # [2H, H]
    w1a_t = w1_t[:H]
    w1b_t = w1_t[H:]
    b1 = params["int_b"].reshape(1, -1)
    w2_t = params["out_w"].T                               # [H, C]
    b2 = params["out_b"].reshape(1, -1)

    out = run_fused(x_flat, wih_all, whh_all, bias_all,
                    w1a_t, w1b_t, b1, w2_t, b2,
                    T=T, Ta=Ta, Tb=Tb, B=B, Bp=Bp,
                    hidden_dim=H, num_classes=num_classes)  # [L, B, C]
    return jnp.squeeze(out)                                 # matches torch.squeeze


def uni_lstm_forward(params, a_seqs, b_seqs, hidden_dim, num_classes):
    Ta = max(len(s) for s in a_seqs)
    Tb = max(len(s) for s in b_seqs)
    T = max(Ta, Tb)
    # Final cell states are captured in-kernel at Ta-1 / Tb-1 per half, so the
    # common padding length T does not change semantics vs. separate padding.
    a_tok = pad_batch(a_seqs, T)
    b_tok = pad_batch(b_seqs, T)
    return _forward(params, a_tok, b_tok, Ta, Tb, hidden_dim, num_classes)


if __name__ == "__main__":
    VOCAB, HIDDEN, LAYERS, CLASSES = 50, 32, 2, 3

    key = jax.random.PRNGKey(0)
    pkey, dkey = jax.random.split(key)
    params = init_params(pkey, VOCAB, HIDDEN, LAYERS, CLASSES)

    # Two variable-length premise/hypothesis batches (batch=2), tokens in [1, VOCAB).
    toks = np.asarray(jax.random.randint(dkey, (4, 8), 1, VOCAB))
    a_seqs = [list(toks[0, :8]), list(toks[1, :5])]
    b_seqs = [list(toks[2, :6]), list(toks[3, :8])]

    out = uni_lstm_forward(params, a_seqs, b_seqs, HIDDEN, CLASSES)
    out = jax.block_until_ready(out)
    assert out.shape == (LAYERS, 2, CLASSES), out.shape
    assert bool(jnp.all(jnp.isfinite(out)))
    print("KERNEL_OK")
</pallas_src>

<mosaic_0001>
module attributes {stable_mosaic.version = 11 : i64} {
  func.func @kernel(%arg0: i32, %arg1: memref<128x32xf32, #tpu.memory_space<vmem>>, %arg2: memref<2x32x128xf32, #tpu.memory_space<vmem>>, %arg3: memref<2x32x128xf32, #tpu.memory_space<vmem>>, %arg4: memref<2x1x128xf32, #tpu.memory_space<vmem>>, %arg5: memref<32x32xf32, #tpu.memory_space<vmem>>, %arg6: memref<32x32xf32, #tpu.memory_space<vmem>>, %arg7: memref<1x32xf32, #tpu.memory_space<vmem>>, %arg8: memref<32x3xf32, #tpu.memory_space<vmem>>, %arg9: memref<1x3xf32, #tpu.memory_space<vmem>>, %arg10: memref<2x2x3xf32, #tpu.memory_space<vmem>>, %arg11: memref<128x32xf32, #tpu.memory_space<vmem>>) attributes {dimension_semantics = [#tpu.dimension_semantics<arbitrary>], iteration_bounds = array<i64: 1>, scalar_prefetch = 0 : i64, scratch_operands = 1 : i64, tpu.core_type = #tpu.core_type<tc>, window_params = [{pipeline_mode = #tpu.pipeline_mode<synchronous>, transform_indices = @transform_0, window_bounds = array<i64: 128, 32>}, {pipeline_mode = #tpu.pipeline_mode<synchronous>, transform_indices = @transform_1, window_bounds = array<i64: 2, 32, 128>}, {pipeline_mode = #tpu.pipeline_mode<synchronous>, transform_indices = @transform_2, window_bounds = array<i64: 2, 32, 128>}, {pipeline_mode = #tpu.pipeline_mode<synchronous>, transform_indices = @transform_3, window_bounds = array<i64: 2, 1, 128>}, {pipeline_mode = #tpu.pipeline_mode<synchronous>, transform_indices = @transform_4, window_bounds = array<i64: 32, 32>}, {pipeline_mode = #tpu.pipeline_mode<synchronous>, transform_indices = @transform_5, window_bounds = array<i64: 32, 32>}, {pipeline_mode = #tpu.pipeline_mode<synchronous>, transform_indices = @transform_6, window_bounds = array<i64: 1, 32>}, {pipeline_mode = #tpu.pipeline_mode<synchronous>, transform_indices = @transform_7, window_bounds = array<i64: 32, 3>}, {pipeline_mode = #tpu.pipeline_mode<synchronous>, transform_indices = @transform_8, window_bounds = array<i64: 1, 3>}, {pipeline_mode = #tpu.pipeline_mode<synchronous>, transform_indices = @transform_9, window_bounds = array<i64: 2, 2, 3>}]} {
    %c0 = arith.constant 0 : index
    %c0_0 = arith.constant 0 : index
    %0 = vector.load %arg1[%c0, %c0_0] : memref<128x32xf32, #tpu.memory_space<vmem>>, vector<128x32xf32>
    %c0_1 = arith.constant 0 : index
    %c0_2 = arith.constant 0 : index
    %c0_3 = arith.constant 0 : index
    %1 = vector.load %arg2[%c0_1, %c0_2, %c0_3] : memref<2x32x128xf32, #tpu.memory_space<vmem>>, vector<1x32x128xf32>
    %2 = vector.shape_cast %1 : vector<1x32x128xf32> to vector<32x128xf32>
    %c0_4 = arith.constant 0 : index
    %c0_5 = arith.constant 0 : index
    %c0_6 = arith.constant 0 : index
    %3 = vector.load %arg3[%c0_4, %c0_5, %c0_6] : memref<2x32x128xf32, #tpu.memory_space<vmem>>, vector<1x32x128xf32>
    %4 = vector.shape_cast %3 : vector<1x32x128xf32> to vector<32x128xf32>
    %c0_7 = arith.constant 0 : index
    %c0_8 = arith.constant 0 : index
    %c0_9 = arith.constant 0 : index
    %5 = vector.load %arg4[%c0_7, %c0_8, %c0_9] : memref<2x1x128xf32, #tpu.memory_space<vmem>>, vector<1x1x128xf32>
    %6 = vector.shape_cast %5 : vector<1x1x128xf32> to vector<1x128xf32>
    %cst = arith.constant dense<0.000000e+00> : vector<128x128xf32>
    %7 = tpu.matmul %0, %2, %cst {dimension_numbers = #tpu.dot_dimension_numbers<[1], [0], [0], [1], [0, 0, 1, 1], [], []>} : vector<128x32xf32>, vector<32x128xf32>, vector<128x128xf32> -> vector<128x128xf32>
    %8 = vector.broadcast %6 : vector<1x128xf32> to vector<128x128xf32>
    %9 = arith.addf %7, %8 : vector<128x128xf32>
    %cst_10 = arith.constant 0.000000e+00 : f32
    %10 = vector.broadcast %cst_10 : f32 to vector<16x32xf32>
    %cst_11 = arith.constant 0.000000e+00 : f32
    %11 = vector.broadcast %cst_11 : f32 to vector<16x32xf32>
    %12 = vector.extract_strided_slice %9 {offsets = [0, 0], sizes = [16, 128], strides = [1, 1]} : vector<128x128xf32> to vector<16x128xf32>
    %cst_12 = arith.constant dense<0.000000e+00> : vector<16x128xf32>
    %13 = tpu.matmul %10, %4, %cst_12 {dimension_numbers = #tpu.dot_dimension_numbers<[1], [0], [0], [1], [0, 0, 1, 1], [], []>} : vector<16x32xf32>, vector<32x128xf32>, vector<16x128xf32> -> vector<16x128xf32>
    %14 = arith.addf %12, %13 : vector<16x128xf32>
    %15 = vector.extract_strided_slice %14 {offsets = [0, 0], sizes = [16, 32], strides = [1, 1]} : vector<16x128xf32> to vector<16x32xf32>
    %16 = arith.negf %15 : vector<16x32xf32>
    %17 = math.exp %16 : vector<16x32xf32>
    %cst_13 = arith.constant 1.000000e+00 : f32
    %18 = vector.broadcast %cst_13 : f32 to vector<16x32xf32>
    %19 = arith.addf %18, %17 : vector<16x32xf32>
    %20 = arith.divf %18, %19 : vector<16x32xf32>
    %21 = vector.extract_strided_slice %14 {offsets = [0, 32], sizes = [16, 32], strides = [1, 1]} : vector<16x128xf32> to vector<16x32xf32>
    %22 = arith.negf %21 : vector<16x32xf32>
    %23 = math.exp %22 : vector<16x32xf32>
    %cst_14 = arith.constant 1.000000e+00 : f32
    %24 = vector.broadcast %cst_14 : f32 to vector<16x32xf32>
    %25 = arith.addf %24, %23 : vector<16x32xf32>
    %26 = arith.divf %24, %25 : vector<16x32xf32>
    %27 = vector.extract_strided_slice %14 {offsets = [0, 64], sizes = [16, 32], strides = [1, 1]} : vector<16x128xf32> to vector<16x32xf32>
    %28 = math.tanh %27 : vector<16x32xf32>
    %29 = vector.extract_strided_slice %14 {offsets = [0, 96], sizes = [16, 32], strides = [1, 1]} : vector<16x128xf32> to vector<16x32xf32>
    %30 = arith.negf %29 : vector<16x32xf32>
    %31 = math.exp %30 : vector<16x32xf32>
    %cst_15 = arith.constant 1.000000e+00 : f32
    %32 = vector.broadcast %cst_15 : f32 to vector<16x32xf32>
    %33 = arith.addf %32, %31 : vector<16x32xf32>
    %34 = arith.divf %32, %33 : vector<16x32xf32>
    %35 = arith.mulf %26, %11 : vector<16x32xf32>
    %36 = arith.mulf %20, %28 : vector<16x32xf32>
    %37 = arith.addf %35, %36 : vector<16x32xf32>
    %38 = math.tanh %37 : vector<16x32xf32>
    %39 = arith.mulf %34, %38 : vector<16x32xf32>
    %c0_16 = arith.constant 0 : index
    %c0_17 = arith.constant 0 : index
    %40 = vector.load %arg11[%c0_16, %c0_17] : memref<128x32xf32, #tpu.memory_space<vmem>>, vector<16x32xf32>
    tpu.vector_store %arg11[%c0_16, %c0_17], %39 {strides = array<i32>} : memref<128x32xf32, #tpu.memory_space<vmem>>, vector<16x32xf32>,
    %41 = vector.extract_strided_slice %9 {offsets = [16, 0], sizes = [16, 128], strides = [1, 1]} : vector<128x128xf32> to vector<16x128xf32>
    %cst_18 = arith.constant dense<0.000000e+00> : vector<16x128xf32>
    %42 = tpu.matmul %39, %4, %cst_18 {dimension_numbers = #tpu.dot_dimension_numbers<[1], [0], [0], [1], [0, 0, 1, 1], [], []>} : vector<16x32xf32>, vector<32x128xf32>, vector<16x128xf32> -> vector<16x128xf32>
    %43 = arith.addf %41, %42 : vector<16x128xf32>
    %44 = vector.extract_strided_slice %43 {offsets = [0, 0], sizes = [16, 32], strides = [1, 1]} : vector<16x128xf32> to vector<16x32xf32>
    %45 = arith.negf %44 : vector<16x32xf32>
    %46 = math.exp %45 : vector<16x32xf32>
    %cst_19 = arith.constant 1.000000e+00 : f32
    %47 = vector.broadcast %cst_19 : f32 to vector<16x32xf32>
    %48 = arith.addf %47, %46 : vector<16x32xf32>
    %49 = arith.divf %47, %48 : vector<16x32xf32>
    %50 = vector.extract_strided_slice %43 {offsets = [0, 32], sizes = [16, 32], strides = [1, 1]} : vector<16x128xf32> to vector<16x32xf32>
    %51 = arith.negf %50 : vector<16x32xf32>
    %52 = math.exp %51 : vector<16x32xf32>
    %cst_20 = arith.constant 1.000000e+00 : f32
    %53 = vector.broadcast %cst_20 : f32 to vector<16x32xf32>
    %54 = arith.addf %53, %52 : vector<16x32xf32>
    %55 = arith.divf %53, %54 : vector<16x32xf32>
    %56 = vector.extract_strided_slice %43 {offsets = [0, 64], sizes = [16, 32], strides = [1, 1]} : vector<16x128xf32> to vector<16x32xf32>
    %57 = math.tanh %56 : vector<16x32xf32>
    %58 = vector.extract_strided_slice %43 {offsets = [0, 96], sizes = [16, 32], strides = [1, 1]} : vector<16x128xf32> to vector<16x32xf32>
    %59 = arith.negf %58 : vector<16x32xf32>
    %60 = math.exp %59 : vector<16x32xf32>
    %cst_21 = arith.constant 1.000000e+00 : f32
    %61 = vector.broadcast %cst_21 : f32 to vector<16x32xf32>
    %62 = arith.addf %61, %60 : vector<16x32xf32>
    %63 = arith.divf %61, %62 : vector<16x32xf32>
    %64 = arith.mulf %55, %37 : vector<16x32xf32>
    %65 = arith.mulf %49, %57 : vector<16x32xf32>
    %66 = arith.addf %64, %65 : vector<16x32xf32>
    %67 = math.tanh %66 : vector<16x32xf32>
    %68 = arith.mulf %63, %67 : vector<16x32xf32>
    %c16 = arith.constant 16 : index
    %c0_22 = arith.constant 0 : index
    %69 = vector.load %arg11[%c16, %c0_22] : memref<128x32xf32, #tpu.memory_space<vmem>>, vector<16x32xf32>
    tpu.vector_store %arg11[%c16, %c0_22], %68 {strides = array<i32>} : memref<128x32xf32, #tpu.memory_space<vmem>>, vector<16x32xf32>,
    %70 = vector.extract_strided_slice %9 {offsets = [32, 0], sizes = [16, 128], strides = [1, 1]} : vector<128x128xf32> to vector<16x128xf32>
    %cst_23 = arith.constant dense<0.000000e+00> : vector<16x128xf32>
    %71 = tpu.matmul %68, %4, %cst_23 {dimension_numbers = #tpu.dot_dimension_numbers<[1], [0], [0], [1], [0, 0, 1, 1], [], []>} : vector<16x32xf32>, vector<32x128xf32>, vector<16x128xf32> -> vector<16x128xf32>
    %72 = arith.addf %70, %71 : vector<16x128xf32>
    %73 = vector.extract_strided_slice %72 {offsets = [0, 0], sizes = [16, 32], strides = [1, 1]} : vector<16x128xf32> to vector<16x32xf32>
    %74 = arith.negf %73 : vector<16x32xf32>
    %75 = math.exp %74 : vector<16x32xf32>
    %cst_24 = arith.constant 1.000000e+00 : f32
    %76 = vector.broadcast %cst_24 : f32 to vector<16x32xf32>
    %77 = arith.addf %76, %75 : vector<16x32xf32>
    %78 = arith.divf %76, %77 : vector<16x32xf32>
    %79 = vector.extract_strided_slice %72 {offsets = [0, 32], sizes = [16, 32], strides = [1, 1]} : vector<16x128xf32> to vector<16x32xf32>
    %80 = arith.negf %79 : vector<16x32xf32>
    %81 = math.exp %80 : vector<16x32xf32>
    %cst_25 = arith.constant 1.000000e+00 : f32
    %82 = vector.broadcast %cst_25 : f32 to vector<16x32xf32>
    %83 = arith.addf %82, %81 : vector<16x32xf32>
    %84 = arith.divf %82, %83 : vector<16x32xf32>
    %85 = vector.extract_strided_slice %72 {offsets = [0, 64], sizes = [16, 32], strides = [1, 1]} : vector<16x128xf32> to vector<16x32xf32>
    %86 = math.tanh %85 : vector<16x32xf32>
    %87 = vector.extract_strided_slice %72 {offsets = [0, 96], sizes = [16, 32], strides = [1, 1]} : vector<16x128xf32> to vector<16x32xf32>
    %88 = arith.negf %87 : vector<16x32xf32>
    %89 = math.exp %88 : vector<16x32xf32>
    %cst_26 = arith.constant 1.000000e+00 : f32
    %90 = vector.broadcast %cst_26 : f32 to vector<16x32xf32>
    %91 = arith.addf %90, %89 : vector<16x32xf32>
    %92 = arith.divf %90, %91 : vector<16x32xf32>
    %93 = arith.mulf %84, %66 : vector<16x32xf32>
    %94 = arith.mulf %78, %86 : vector<16x32xf32>
    %95 = arith.addf %93, %94 : vector<16x32xf32>
    %96 = math.tanh %95 : vector<16x32xf32>
    %97 = arith.mulf %92, %96 : vector<16x32xf32>
    %c32 = arith.constant 32 : index
    %c0_27 = arith.constant 0 : index
    %98 = vector.load %arg11[%c32, %c0_27] : memref<128x32xf32, #tpu.memory_space<vmem>>, vector<16x32xf32>
    tpu.vector_store %arg11[%c32, %c0_27], %97 {strides = array<i32>} : memref<128x32xf32, #tpu.memory_space<vmem>>, vector<16x32xf32>,
    %99 = vector.extract_strided_slice %9 {offsets = [48, 0], sizes = [16, 128], strides = [1, 1]} : vector<128x128xf32> to vector<16x128xf32>
    %cst_28 = arith.constant dense<0.000000e+00> : vector<16x128xf32>
    %100 = tpu.matmul %97, %4, %cst_28 {dimension_numbers = #tpu.dot_dimension_numbers<[1], [0], [0], [1], [0, 0, 1, 1], [], []>} : vector<16x32xf32>, vector<32x128xf32>, vector<16x128xf32> -> vector<16x128xf32>
    %101 = arith.addf %99, %100 : vector<16x128xf32>
    %102 = vector.extract_strided_slice %101 {offsets = [0, 0], sizes = [16, 32], strides = [1, 1]} : vector<16x128xf32> to vector<16x32xf32>
    %103 = arith.negf %102 : vector<16x32xf32>
    %104 = math.exp %103 : vector<16x32xf32>
    %cst_29 = arith.constant 1.000000e+00 : f32
    %105 = vector.broadcast %cst_29 : f32 to vector<16x32xf32>
    %106 = arith.addf %105, %104 : vector<16x32xf32>
    %107 = arith.divf %105, %106 : vector<16x32xf32>
    %108 = vector.extract_strided_slice %101 {offsets = [0, 32], sizes = [16, 32], strides = [1, 1]} : vector<16x128xf32> to vector<16x32xf32>
    %109 = arith.negf %108 : vector<16x32xf32>
    %110 = math.exp %109 : vector<16x32xf32>
    %cst_30 = arith.constant 1.000000e+00 : f32
    %111 = vector.broadcast %cst_30 : f32 to vector<16x32xf32>
    %112 = arith.addf %111, %110 : vector<16x32xf32>
    %113 = arith.divf %111, %112 : vector<16x32xf32>
    %114 = vector.extract_strided_slice %101 {offsets = [0, 64], sizes = [16, 32], strides = [1, 1]} : vector<16x128xf32> to vector<16x32xf32>
    %115 = math.tanh %114 : vector<16x32xf32>
    %116 = vector.extract_strided_slice %101 {offsets = [0, 96], sizes = [16, 32], strides = [1, 1]} : vector<16x128xf32> to vector<16x32xf32>
    %117 = arith.negf %116 : vector<16x32xf32>
    %118 = math.exp %117 : vector<16x32xf32>
    %cst_31 = arith.constant 1.000000e+00 : f32
    %119 = vector.broadcast %cst_31 : f32 to vector<16x32xf32>
    %120 = arith.addf %119, %118 : vector<16x32xf32>
    %121 = arith.divf %119, %120 : vector<16x32xf32>
    %122 = arith.mulf %113, %95 : vector<16x32xf32>
    %123 = arith.mulf %107, %115 : vector<16x32xf32>
    %124 = arith.addf %122, %123 : vector<16x32xf32>
    %125 = math.tanh %124 : vector<16x32xf32>
    %126 = arith.mulf %121, %125 : vector<16x32xf32>
    %c48 = arith.constant 48 : index
    %c0_32 = arith.constant 0 : index
    %127 = vector.load %arg11[%c48, %c0_32] : memref<128x32xf32, #tpu.memory_space<vmem>>, vector<16x32xf32>
    tpu.vector_store %arg11[%c48, %c0_32], %126 {strides = array<i32>} : memref<128x32xf32, #tpu.memory_space<vmem>>, vector<16x32xf32>,
    %128 = vector.extract_strided_slice %9 {offsets = [64, 0], sizes = [16, 128], strides = [1, 1]} : vector<128x128xf32> to vector<16x128xf32>
    %cst_33 = arith.constant dense<0.000000e+00> : vector<16x128xf32>
    %129 = tpu.matmul %126, %4, %cst_33 {dimension_numbers = #tpu.dot_dimension_numbers<[1], [0], [0], [1], [0, 0, 1, 1], [], []>} : vector<16x32xf32>, vector<32x128xf32>, vector<16x128xf32> -> vector<16x128xf32>
    %130 = arith.addf %128, %129 : vector<16x128xf32>
    %131 = vector.extract_strided_slice %130 {offsets = [0, 0], sizes = [16, 32], strides = [1, 1]} : vector<16x128xf32> to vector<16x32xf32>
    %132 = arith.negf %131 : vector<16x32xf32>
    %133 = math.exp %132 : vector<16x32xf32>
    %cst_34 = arith.constant 1.000000e+00 : f32
    %134 = vector.broadcast %cst_34 : f32 to vector<16x32xf32>
    %135 = arith.addf %134, %133 : vector<16x32xf32>
    %136 = arith.divf %134, %135 : vector<16x32xf32>
    %137 = vector.extract_strided_slice %130 {offsets = [0, 32], sizes = [16, 32], strides = [1, 1]} : vector<16x128xf32> to vector<16x32xf32>
    %138 = arith.negf %137 : vector<16x32xf32>
    %139 = math.exp %138 : vector<16x32xf32>
    %cst_35 = arith.constant 1.000000e+00 : f32
    %140 = vector.broadcast %cst_35 : f32 to vector<16x32xf32>
    %141 = arith.addf %140, %139 : vector<16x32xf32>
    %142 = arith.divf %140, %141 : vector<16x32xf32>
    %143 = vector.extract_strided_slice %130 {offsets = [0, 64], sizes = [16, 32], strides = [1, 1]} : vector<16x128xf32> to vector<16x32xf32>
    %144 = math.tanh %143 : vector<16x32xf32>
    %145 = vector.extract_strided_slice %130 {offsets = [0, 96], sizes = [16, 32], strides = [1, 1]} : vector<16x128xf32> to vector<16x32xf32>
    %146 = arith.negf %145 : vector<16x32xf32>
    %147 = math.exp %146 : vector<16x32xf32>
    %cst_36 = arith.constant 1.000000e+00 : f32
    %148 = vector.broadcast %cst_36 : f32 to vector<16x32xf32>
    %149 = arith.addf %148, %147 : vector<16x32xf32>
    %150 = arith.divf %148, %149 : vector<16x32xf32>
    %151 = arith.mulf %142, %124 : vector<16x32xf32>
    %152 = arith.mulf %136, %144 : vector<16x32xf32>
    %153 = arith.addf %151, %152 : vector<16x32xf32>
    %154 = math.tanh %153 : vector<16x32xf32>
    %155 = arith.mulf %150, %154 : vector<16x32xf32>
    %c64 = arith.constant 64 : index
    %c0_37 = arith.constant 0 : index
    %156 = vector.load %arg11[%c64, %c0_37] : memref<128x32xf32, #tpu.memory_space<vmem>>, vector<16x32xf32>
    tpu.vector_store %arg11[%c64, %c0_37], %155 {strides = array<i32>} : memref<128x32xf32, #tpu.memory_space<vmem>>, vector<16x32xf32>,
    %157 = vector.extract_strided_slice %9 {offsets = [80, 0], sizes = [16, 128], strides = [1, 1]} : vector<128x128xf32> to vector<16x128xf32>
    %cst_38 = arith.constant dense<0.000000e+00> : vector<16x128xf32>
    %158 = tpu.matmul %155, %4, %cst_38 {dimension_numbers = #tpu.dot_dimension_numbers<[1], [0], [0], [1], [0, 0, 1, 1], [], []>} : vector<16x32xf32>, vector<32x128xf32>, vector<16x128xf32> -> vector<16x128xf32>
    %159 = arith.addf %157, %158 : vector<16x128xf32>
    %160 = vector.extract_strided_slice %159 {offsets = [0, 0], sizes = [16, 32], strides = [1, 1]} : vector<16x128xf32> to vector<16x32xf32>
    %161 = arith.negf %160 : vector<16x32xf32>
    %162 = math.exp %161 : vector<16x32xf32>
    %cst_39 = arith.constant 1.000000e+00 : f32
    %163 = vector.broadcast %cst_39 : f32 to vector<16x32xf32>
    %164 = arith.addf %163, %162 : vector<16x32xf32>
    %165 = arith.divf %163, %164 : vector<16x32xf32>
    %166 = vector.extract_strided_slice %159 {offsets = [0, 32], sizes = [16, 32], strides = [1, 1]} : vector<16x128xf32> to vector<16x32xf32>
    %167 = arith.negf %166 : vector<16x32xf32>
    %168 = math.exp %167 : vector<16x32xf32>
    %cst_40 = arith.constant 1.000000e+00 : f32
    %169 = vector.broadcast %cst_40 : f32 to vector<16x32xf32>
    %170 = arith.addf %169, %168 : vector<16x32xf32>
    %171 = arith.divf %169, %170 : vector<16x32xf32>
    %172 = vector.extract_strided_slice %159 {offsets = [0, 64], sizes = [16, 32], strides = [1, 1]} : vector<16x128xf32> to vector<16x32xf32>
    %173 = math.tanh %172 : vector<16x32xf32>
    %174 = vector.extract_strided_slice %159 {offsets = [0, 96], sizes = [16, 32], strides = [1, 1]} : vector<16x128xf32> to vector<16x32xf32>
    %175 = arith.negf %174 : vector<16x32xf32>
    %176 = math.exp %175 : vector<16x32xf32>
    %cst_41 = arith.constant 1.000000e+00 : f32
    %177 = vector.broadcast %cst_41 : f32 to vector<16x32xf32>
    %178 = arith.addf %177, %176 : vector<16x32xf32>
    %179 = arith.divf %177, %178 : vector<16x32xf32>
    %180 = arith.mulf %171, %153 : vector<16x32xf32>
    %181 = arith.mulf %165, %173 : vector<16x32xf32>
    %182 = arith.addf %180, %181 : vector<16x32xf32>
    %183 = math.tanh %182 : vector<16x32xf32>
    %184 = arith.mulf %179, %183 : vector<16x32xf32>
    %c80 = arith.constant 80 : index
    %c0_42 = arith.constant 0 : index
    %185 = vector.load %arg11[%c80, %c0_42] : memref<128x32xf32, #tpu.memory_space<vmem>>, vector<16x32xf32>
    tpu.vector_store %arg11[%c80, %c0_42], %184 {strides = array<i32>} : memref<128x32xf32, #tpu.memory_space<vmem>>, vector<16x32xf32>,
    %186 = vector.extract_strided_slice %9 {offsets = [96, 0], sizes = [16, 128], strides = [1, 1]} : vector<128x128xf32> to vector<16x128xf32>
    %cst_43 = arith.constant dense<0.000000e+00> : vector<16x128xf32>
    %187 = tpu.matmul %184, %4, %cst_43 {dimension_numbers = #tpu.dot_dimension_numbers<[1], [0], [0], [1], [0, 0, 1, 1], [], []>} : vector<16x32xf32>, vector<32x128xf32>, vector<16x128xf32> -> vector<16x128xf32>
    %188 = arith.addf %186, %187 : vector<16x128xf32>
    %189 = vector.extract_strided_slice %188 {offsets = [0, 0], sizes = [16, 32], strides = [1, 1]} : vector<16x128xf32> to vector<16x32xf32>
    %190 = arith.negf %189 : vector<16x32xf32>
    %191 = math.exp %190 : vector<16x32xf32>
    %cst_44 = arith.constant 1.000000e+00 : f32
    %192 = vector.broadcast %cst_44 : f32 to vector<16x32xf32>
    %193 = arith.addf %192, %191 : vector<16x32xf32>
    %194 = arith.divf %192, %193 : vector<16x32xf32>
    %195 = vector.extract_strided_slice %188 {offsets = [0, 32], sizes = [16, 32], strides = [1, 1]} : vector<16x128xf32> to vector<16x32xf32>
    %196 = arith.negf %195 : vector<16x32xf32>
    %197 = math.exp %196 : vector<16x32xf32>
    %cst_45 = arith.constant 1.000000e+00 : f32
    %198 = vector.broadcast %cst_45 : f32 to vector<16x32xf32>
    %199 = arith.addf %198, %197 : vector<16x32xf32>
    %200 = arith.divf %198, %199 : vector<16x32xf32>
    %201 = vector.extract_strided_slice %188 {offsets = [0, 64], sizes = [16, 32], strides = [1, 1]} : vector<16x128xf32> to vector<16x32xf32>
    %202 = math.tanh %201 : vector<16x32xf32>
    %203 = vector.extract_strided_slice %188 {offsets = [0, 96], sizes = [16, 32], strides = [1, 1]} : vector<16x128xf32> to vector<16x32xf32>
    %204 = arith.negf %203 : vector<16x32xf32>
    %205 = math.exp %204 : vector<16x32xf32>
    %cst_46 = arith.constant 1.000000e+00 : f32
    %206 = vector.broadcast %cst_46 : f32 to vector<16x32xf32>
    %207 = arith.addf %206, %205 : vector<16x32xf32>
    %208 = arith.divf %206, %207 : vector<16x32xf32>
    %209 = arith.mulf %200, %182 : vector<16x32xf32>
    %210 = arith.mulf %194, %202 : vector<16x32xf32>
    %211 = arith.addf %209, %210 : vector<16x32xf32>
    %212 = math.tanh %211 : vector<16x32xf32>
    %213 = arith.mulf %208, %212 : vector<16x32xf32>
    %c96 = arith.constant 96 : index
    %c0_47 = arith.constant 0 : index
    %214 = vector.load %arg11[%c96, %c0_47] : memref<128x32xf32, #tpu.memory_space<vmem>>, vector<16x32xf32>
    tpu.vector_store %arg11[%c96, %c0_47], %213 {strides = array<i32>} : memref<128x32xf32, #tpu.memory_space<vmem>>, vector<16x32xf32>,
    %215 = vector.extract_strided_slice %9 {offsets = [112, 0], sizes = [16, 128], strides = [1, 1]} : vector<128x128xf32> to vector<16x128xf32>
    %cst_48 = arith.constant dense<0.000000e+00> : vector<16x128xf32>
    %216 = tpu.matmul %213, %4, %cst_48 {dimension_numbers = #tpu.dot_dimension_numbers<[1], [0], [0], [1], [0, 0, 1, 1], [], []>} : vector<16x32xf32>, vector<32x128xf32>, vector<16x128xf32> -> vector<16x128xf32>
    %217 = arith.addf %215, %216 : vector<16x128xf32>
    %218 = vector.extract_strided_slice %217 {offsets = [0, 0], sizes = [16, 32], strides = [1, 1]} : vector<16x128xf32> to vector<16x32xf32>
    %219 = arith.negf %218 : vector<16x32xf32>
    %220 = math.exp %219 : vector<16x32xf32>
    %cst_49 = arith.constant 1.000000e+00 : f32
    %221 = vector.broadcast %cst_49 : f32 to vector<16x32xf32>
    %222 = arith.addf %221, %220 : vector<16x32xf32>
    %223 = arith.divf %221, %222 : vector<16x32xf32>
    %224 = vector.extract_strided_slice %217 {offsets = [0, 32], sizes = [16, 32], strides = [1, 1]} : vector<16x128xf32> to vector<16x32xf32>
    %225 = arith.negf %224 : vector<16x32xf32>
    %226 = math.exp %225 : vector<16x32xf32>
    %cst_50 = arith.constant 1.000000e+00 : f32
    %227 = vector.broadcast %cst_50 : f32 to vector<16x32xf32>
    %228 = arith.addf %227, %226 : vector<16x32xf32>
    %229 = arith.divf %227, %228 : vector<16x32xf32>
    %230 = vector.extract_strided_slice %217 {offsets = [0, 64], sizes = [16, 32], strides = [1, 1]} : vector<16x128xf32> to vector<16x32xf32>
    %231 = math.tanh %230 : vector<16x32xf32>
    %232 = vector.extract_strided_slice %217 {offsets = [0, 96], sizes = [16, 32], strides = [1, 1]} : vector<16x128xf32> to vector<16x32xf32>
    %233 = arith.negf %232 : vector<16x32xf32>
    %234 = math.exp %233 : vector<16x32xf32>
    %cst_51 = arith.constant 1.000000e+00 : f32
    %235 = vector.broadcast %cst_51 : f32 to vector<16x32xf32>
    %236 = arith.addf %235, %234 : vector<16x32xf32>
    %237 = arith.divf %235, %236 : vector<16x32xf32>
    %238 = arith.mulf %229, %211 : vector<16x32xf32>
    %239 = arith.mulf %223, %231 : vector<16x32xf32>
    %240 = arith.addf %238, %239 : vector<16x32xf32>
    %241 = math.tanh %240 : vector<16x32xf32>
    %242 = arith.mulf %237, %241 : vector<16x32xf32>
    %c112 = arith.constant 112 : index
    %c0_52 = arith.constant 0 : index
    %243 = vector.load %arg11[%c112, %c0_52] : memref<128x32xf32, #tpu.memory_space<vmem>>, vector<16x32xf32>
    tpu.vector_store %arg11[%c112, %c0_52], %242 {strides = array<i32>} : memref<128x32xf32, #tpu.memory_space<vmem>>, vector<16x32xf32>,
    %244 = vector.extract_strided_slice %240 {offsets = [0, 0], sizes = [2, 32], strides = [1, 1]} : vector<16x32xf32> to vector<2x32xf32>
    %245 = vector.extract_strided_slice %240 {offsets = [8, 0], sizes = [2, 32], strides = [1, 1]} : vector<16x32xf32> to vector<2x32xf32>
    %c0_53 = arith.constant 0 : index
    %c0_54 = arith.constant 0 : index
    %246 = vector.load %arg5[%c0_53, %c0_54] : memref<32x32xf32, #tpu.memory_space<vmem>>, vector<32x32xf32>
    %cst_55 = arith.constant dense<0.000000e+00> : vector<2x32xf32>
    %247 = tpu.matmul %244, %246, %cst_55 {dimension_numbers = #tpu.dot_dimension_numbers<[1], [0], [0], [1], [0, 0, 1, 1], [], []>} : vector<2x32xf32>, vector<32x32xf32>, vector<2x32xf32> -> vector<2x32xf32>
    %c0_56 = arith.constant 0 : index
    %c0_57 = arith.constant 0 : index
    %248 = vector.load %arg6[%c0_56, %c0_57] : memref<32x32xf32, #tpu.memory_space<vmem>>, vector<32x32xf32>
    %cst_58 = arith.constant dense<0.000000e+00> : vector<2x32xf32>
    %249 = tpu.matmul %245, %248, %cst_58 {dimension_numbers = #tpu.dot_dimension_numbers<[1], [0], [0], [1], [0, 0, 1, 1], [], []>} : vector<2x32xf32>, vector<32x32xf32>, vector<2x32xf32> -> vector<2x32xf32>
    %250 = arith.addf %247, %249 : vector<2x32xf32>
    %c0_59 = arith.constant 0 : index
    %c0_60 = arith.constant 0 : index
    %251 = vector.load %arg7[%c0_59, %c0_60] : memref<1x32xf32, #tpu.memory_space<vmem>>, vector<1x32xf32>
    %252 = vector.broadcast %251 : vector<1x32xf32> to vector<2x32xf32>
    %253 = arith.addf %250, %252 : vector<2x32xf32>
    %cst_61 = arith.constant 0.000000e+00 : f32
    %254 = vector.broadcast %cst_61 : f32 to vector<2x32xf32>
    %255 = arith.maximumf %253, %254 : vector<2x32xf32>
    %c0_62 = arith.constant 0 : index
    %c0_63 = arith.constant 0 : index
    %256 = vector.load %arg8[%c0_62, %c0_63] : memref<32x3xf32, #tpu.memory_space<vmem>>, vector<32x3xf32>
    %cst_64 = arith.constant dense<0.000000e+00> : vector<2x3xf32>
    %257 = tpu.matmul %255, %256, %cst_64 {dimension_numbers = #tpu.dot_dimension_numbers<[1], [0], [0], [1], [0, 0, 1, 1], [], []>} : vector<2x32xf32>, vector<32x3xf32>, vector<2x3xf32> -> vector<2x3xf32>
    %c0_65 = arith.constant 0 : index
    %c0_66 = arith.constant 0 : index
    %258 = vector.load %arg9[%c0_65, %c0_66] : memref<1x3xf32, #tpu.memory_space<vmem>>, vector<1x3xf32>
    %259 = vector.broadcast %258 : vector<1x3xf32> to vector<2x3xf32>
    %260 = arith.addf %257, %259 : vector<2x3xf32>
    %c0_67 = arith.constant 0 : index
    %c0_68 = arith.constant 0 : index
    %c0_69 = arith.constant 0 : index
    %261 = vector.load %arg10[%c0_67, %c0_68, %c0_69] : memref<2x2x3xf32, #tpu.memory_space<vmem>>, vector<1x2x3xf32>
    %262 = vector.shape_cast %261 : vector<1x2x3xf32> to vector<2x3xf32>
    %263 = vector.shape_cast %260 : vector<2x3xf32> to vector<1x2x3xf32>
    tpu.vector_store %arg10[%c0_67, %c0_68, %c0_69], %263 {strides = array<i32>} : memref<2x2x3xf32, #tpu.memory_space<vmem>>, vector<1x2x3xf32>,
    %c0_70 = arith.constant 0 : index
    %c0_71 = arith.constant 0 : index
    %264 = vector.load %arg11[%c0_70, %c0_71] : memref<128x32xf32, #tpu.memory_space<vmem>>, vector<128x32xf32>
    %c1 = arith.constant 1 : index
    %c0_72 = arith.constant 0 : index
    %c0_73 = arith.constant 0 : index
    %265 = vector.load %arg2[%c1, %c0_72, %c0_73] : memref<2x32x128xf32, #tpu.memory_space<vmem>>, vector<1x32x128xf32>
    %266 = vector.shape_cast %265 : vector<1x32x128xf32> to vector<32x128xf32>
    %c1_74 = arith.constant 1 : index
    %c0_75 = arith.constant 0 : index
    %c0_76 = arith.constant 0 : index
    %267 = vector.load %arg3[%c1_74, %c0_75, %c0_76] : memref<2x32x128xf32, #tpu.memory_space<vmem>>, vector<1x32x128xf32>
    %268 = vector.shape_cast %267 : vector<1x32x128xf32> to vector<32x128xf32>
    %c1_77 = arith.constant 1 : index
    %c0_78 = arith.constant 0 : index
    %c0_79 = arith.constant 0 : index
    %269 = vector.load %arg4[%c1_77, %c0_78, %c0_79] : memref<2x1x128xf32, #tpu.memory_space<vmem>>, vector<1x1x128xf32>
    %270 = vector.shape_cast %269 : vector<1x1x128xf32> to vector<1x128xf32>
    %cst_80 = arith.constant dense<0.000000e+00> : vector<128x128xf32>
    %271 = tpu.matmul %264, %266, %cst_80 {dimension_numbers = #tpu.dot_dimension_numbers<[1], [0], [0], [1], [0, 0, 1, 1], [], []>} : vector<128x32xf32>, vector<32x128xf32>, vector<128x128xf32> -> vector<128x128xf32>
    %272 = vector.broadcast %270 : vector<1x128xf32> to vector<128x128xf32>
    %273 = arith.addf %271, %272 : vector<128x128xf32>
    %cst_81 = arith.constant 0.000000e+00 : f32
    %274 = vector.broadcast %cst_81 : f32 to vector<16x32xf32>
    %cst_82 = arith.constant 0.000000e+00 : f32
    %275 = vector.broadcast %cst_82 : f32 to vector<16x32xf32>
    %276 = vector.extract_strided_slice %273 {offsets = [0, 0], sizes = [16, 128], strides = [1, 1]} : vector<128x128xf32> to vector<16x128xf32>
    %cst_83 = arith.constant dense<0.000000e+00> : vector<16x128xf32>
    %277 = tpu.matmul %274, %268, %cst_83 {dimension_numbers = #tpu.dot_dimension_numbers<[1], [0], [0], [1], [0, 0, 1, 1], [], []>} : vector<16x32xf32>, vector<32x128xf32>, vector<16x128xf32> -> vector<16x128xf32>
    %278 = arith.addf %276, %277 : vector<16x128xf32>
    %279 = vector.extract_strided_slice %278 {offsets = [0, 0], sizes = [16, 32], strides = [1, 1]} : vector<16x128xf32> to vector<16x32xf32>
    %280 = arith.negf %279 : vector<16x32xf32>
    %281 = math.exp %280 : vector<16x32xf32>
    %cst_84 = arith.constant 1.000000e+00 : f32
    %282 = vector.broadcast %cst_84 : f32 to vector<16x32xf32>
    %283 = arith.addf %282, %281 : vector<16x32xf32>
    %284 = arith.divf %282, %283 : vector<16x32xf32>
    %285 = vector.extract_strided_slice %278 {offsets = [0, 32], sizes = [16, 32], strides = [1, 1]} : vector<16x128xf32> to vector<16x32xf32>
    %286 = arith.negf %285 : vector<16x32xf32>
    %287 = math.exp %286 : vector<16x32xf32>
    %cst_85 = arith.constant 1.000000e+00 : f32
    %288 = vector.broadcast %cst_85 : f32 to vector<16x32xf32>
    %289 = arith.addf %288, %287 : vector<16x32xf32>
    %290 = arith.divf %288, %289 : vector<16x32xf32>
    %291 = vector.extract_strided_slice %278 {offsets = [0, 64], sizes = [16, 32], strides = [1, 1]} : vector<16x128xf32> to vector<16x32xf32>
    %292 = math.tanh %291 : vector<16x32xf32>
    %293 = vector.extract_strided_slice %278 {offsets = [0, 96], sizes = [16, 32], strides = [1, 1]} : vector<16x128xf32> to vector<16x32xf32>
    %294 = arith.negf %293 : vector<16x32xf32>
    %295 = math.exp %294 : vector<16x32xf32>
    %cst_86 = arith.constant 1.000000e+00 : f32
    %296 = vector.broadcast %cst_86 : f32 to vector<16x32xf32>
    %297 = arith.addf %296, %295 : vector<16x32xf32>
    %298 = arith.divf %296, %297 : vector<16x32xf32>
    %299 = arith.mulf %290, %275 : vector<16x32xf32>
    %300 = arith.mulf %284, %292 : vector<16x32xf32>
    %301 = arith.addf %299, %300 : vector<16x32xf32>
    %302 = math.tanh %301 : vector<16x32xf32>
    %303 = arith.mulf %298, %302 : vector<16x32xf32>
    %304 = vector.extract_strided_slice %273 {offsets = [16, 0], sizes = [16, 128], strides = [1, 1]} : vector<128x128xf32> to vector<16x128xf32>
    %cst_87 = arith.constant dense<0.000000e+00> : vector<16x128xf32>
    %305 = tpu.matmul %303, %268, %cst_87 {dimension_numbers = #tpu.dot_dimension_numbers<[1], [0], [0], [1], [0, 0, 1, 1], [], []>} : vector<16x32xf32>, vector<32x128xf32>, vector<16x128xf32> -> vector<16x128xf32>
    %306 = arith.addf %304, %305 : vector<16x128xf32>
    %307 = vector.extract_strided_slice %306 {offsets = [0, 0], sizes = [16, 32], strides = [1, 1]} : vector<16x128xf32> to vector<16x32xf32>
    %308 = arith.negf %307 : vector<16x32xf32>
    %309 = math.exp %308 : vector<16x32xf32>
    %cst_88 = arith.constant 1.000000e+00 : f32
    %310 = vector.broadcast %cst_88 : f32 to vector<16x32xf32>
    %311 = arith.addf %310, %309 : vector<16x32xf32>
    %312 = arith.divf %310, %311 : vector<16x32xf32>
    %313 = vector.extract_strided_slice %306 {offsets = [0, 32], sizes = [16, 32], strides = [1, 1]} : vector<16x128xf32> to vector<16x32xf32>
    %314 = arith.negf %313 : vector<16x32xf32>
    %315 = math.exp %314 : vector<16x32xf32>
    %cst_89 = arith.constant 1.000000e+00 : f32
    %316 = vector.broadcast %cst_89 : f32 to vector<16x32xf32>
    %317 = arith.addf %316, %315 : vector<16x32xf32>
    %318 = arith.divf %316, %317 : vector<16x32xf32>
    %319 = vector.extract_strided_slice %306 {offsets = [0, 64], sizes = [16, 32], strides = [1, 1]} : vector<16x128xf32> to vector<16x32xf32>
    %320 = math.tanh %319 : vector<16x32xf32>
    %321 = vector.extract_strided_slice %306 {offsets = [0, 96], sizes = [16, 32], strides = [1, 1]} : vector<16x128xf32> to vector<16x32xf32>
    %322 = arith.negf %321 : vector<16x32xf32>
    %323 = math.exp %322 : vector<16x32xf32>
    %cst_90 = arith.constant 1.000000e+00 : f32
    %324 = vector.broadcast %cst_90 : f32 to vector<16x32xf32>
    %325 = arith.addf %324, %323 : vector<16x32xf32>
    %326 = arith.divf %324, %325 : vector<16x32xf32>
    %327 = arith.mulf %318, %301 : vector<16x32xf32>
    %328 = arith.mulf %312, %320 : vector<16x32xf32>
    %329 = arith.addf %327, %328 : vector<16x32xf32>
    %330 = math.tanh %329 : vector<16x32xf32>
    %331 = arith.mulf %326, %330 : vector<16x32xf32>
    %332 = vector.extract_strided_slice %273 {offsets = [32, 0], sizes = [16, 128], strides = [1, 1]} : vector<128x128xf32> to vector<16x128xf32>
    %cst_91 = arith.constant dense<0.000000e+00> : vector<16x128xf32>
    %333 = tpu.matmul %331, %268, %cst_91 {dimension_numbers = #tpu.dot_dimension_numbers<[1], [0], [0], [1], [0, 0, 1, 1], [], []>} : vector<16x32xf32>, vector<32x128xf32>, vector<16x128xf32> -> vector<16x128xf32>
    %334 = arith.addf %332, %333 : vector<16x128xf32>
    %335 = vector.extract_strided_slice %334 {offsets = [0, 0], sizes = [16, 32], strides = [1, 1]} : vector<16x128xf32> to vector<16x32xf32>
    %336 = arith.negf %335 : vector<16x32xf32>
    %337 = math.exp %336 : vector<16x32xf32>
    %cst_92 = arith.constant 1.000000e+00 : f32
    %338 = vector.broadcast %cst_92 : f32 to vector<16x32xf32>
    %339 = arith.addf %338, %337 : vector<16x32xf32>
    %340 = arith.divf %338, %339 : vector<16x32xf32>
    %341 = vector.extract_strided_slice %334 {offsets = [0, 32], sizes = [16, 32], strides = [1, 1]} : vector<16x128xf32> to vector<16x32xf32>
    %342 = arith.negf %341 : vector<16x32xf32>
    %343 = math.exp %342 : vector<16x32xf32>
    %cst_93 = arith.constant 1.000000e+00 : f32
    %344 = vector.broadcast %cst_93 : f32 to vector<16x32xf32>
    %345 = arith.addf %344, %343 : vector<16x32xf32>
    %346 = arith.divf %344, %345 : vector<16x32xf32>
    %347 = vector.extract_strided_slice %334 {offsets = [0, 64], sizes = [16, 32], strides = [1, 1]} : vector<16x128xf32> to vector<16x32xf32>
    %348 = math.tanh %347 : vector<16x32xf32>
    %349 = vector.extract_strided_slice %334 {offsets = [0, 96], sizes = [16, 32], strides = [1, 1]} : vector<16x128xf32> to vector<16x32xf32>
    %350 = arith.negf %349 : vector<16x32xf32>
    %351 = math.exp %350 : vector<16x32xf32>
    %cst_94 = arith.constant 1.000000e+00 : f32
    %352 = vector.broadcast %cst_94 : f32 to vector<16x32xf32>
    %353 = arith.addf %352, %351 : vector<16x32xf32>
    %354 = arith.divf %352, %353 : vector<16x32xf32>
    %355 = arith.mulf %346, %329 : vector<16x32xf32>
    %356 = arith.mulf %340, %348 : vector<16x32xf32>
    %357 = arith.addf %355, %356 : vector<16x32xf32>
    %358 = math.tanh %357 : vector<16x32xf32>
    %359 = arith.mulf %354, %358 : vector<16x32xf32>
    %360 = vector.extract_strided_slice %273 {offsets = [48, 0], sizes = [16, 128], strides = [1, 1]} : vector<128x128xf32> to vector<16x128xf32>
    %cst_95 = arith.constant dense<0.000000e+00> : vector<16x128xf32>
    %361 = tpu.matmul %359, %268, %cst_95 {dimension_numbers = #tpu.dot_dimension_numbers<[1], [0], [0], [1], [0, 0, 1, 1], [], []>} : vector<16x32xf32>, vector<32x128xf32>, vector<16x128xf32> -> vector<16x128xf32>
    %362 = arith.addf %360, %361 : vector<16x128xf32>
    %363 = vector.extract_strided_slice %362 {offsets = [0, 0], sizes = [16, 32], strides = [1, 1]} : vector<16x128xf32> to vector<16x32xf32>
    %364 = arith.negf %363 : vector<16x32xf32>
    %365 = math.exp %364 : vector<16x32xf32>
    %cst_96 = arith.constant 1.000000e+00 : f32
    %366 = vector.broadcast %cst_96 : f32 to vector<16x32xf32>
    %367 = arith.addf %366, %365 : vector<16x32xf32>
    %368 = arith.divf %366, %367 : vector<16x32xf32>
    %369 = vector.extract_strided_slice %362 {offsets = [0, 32], sizes = [16, 32], strides = [1, 1]} : vector<16x128xf32> to vector<16x32xf32>
    %370 = arith.negf %369 : vector<16x32xf32>
    %371 = math.exp %370 : vector<16x32xf32>
    %cst_97 = arith.constant 1.000000e+00 : f32
    %372 = vector.broadcast %cst_97 : f32 to vector<16x32xf32>
    %373 = arith.addf %372, %371 : vector<16x32xf32>
    %374 = arith.divf %372, %373 : vector<16x32xf32>
    %375 = vector.extract_strided_slice %362 {offsets = [0, 64], sizes = [16, 32], strides = [1, 1]} : vector<16x128xf32> to vector<16x32xf32>
    %376 = math.tanh %375 : vector<16x32xf32>
    %377 = vector.extract_strided_slice %362 {offsets = [0, 96], sizes = [16, 32], strides = [1, 1]} : vector<16x128xf32> to vector<16x32xf32>
    %378 = arith.negf %377 : vector<16x32xf32>
    %379 = math.exp %378 : vector<16x32xf32>
    %cst_98 = arith.constant 1.000000e+00 : f32
    %380 = vector.broadcast %cst_98 : f32 to vector<16x32xf32>
    %381 = arith.addf %380, %379 : vector<16x32xf32>
    %382 = arith.divf %380, %381 : vector<16x32xf32>
    %383 = arith.mulf %374, %357 : vector<16x32xf32>
    %384 = arith.mulf %368, %376 : vector<16x32xf32>
    %385 = arith.addf %383, %384 : vector<16x32xf32>
    %386 = math.tanh %385 : vector<16x32xf32>
    %387 = arith.mulf %382, %386 : vector<16x32xf32>
    %388 = vector.extract_strided_slice %273 {offsets = [64, 0], sizes = [16, 128], strides = [1, 1]} : vector<128x128xf32> to vector<16x128xf32>
    %cst_99 = arith.constant dense<0.000000e+00> : vector<16x128xf32>
    %389 = tpu.matmul %387, %268, %cst_99 {dimension_numbers = #tpu.dot_dimension_numbers<[1], [0], [0], [1], [0, 0, 1, 1], [], []>} : vector<16x32xf32>, vector<32x128xf32>, vector<16x128xf32> -> vector<16x128xf32>
    %390 = arith.addf %388, %389 : vector<16x128xf32>
    %391 = vector.extract_strided_slice %390 {offsets = [0, 0], sizes = [16, 32], strides = [1, 1]} : vector<16x128xf32> to vector<16x32xf32>
    %392 = arith.negf %391 : vector<16x32xf32>
    %393 = math.exp %392 : vector<16x32xf32>
    %cst_100 = arith.constant 1.000000e+00 : f32
    %394 = vector.broadcast %cst_100 : f32 to vector<16x32xf32>
    %395 = arith.addf %394, %393 : vector<16x32xf32>
    %396 = arith.divf %394, %395 : vector<16x32xf32>
    %397 = vector.extract_strided_slice %390 {offsets = [0, 32], sizes = [16, 32], strides = [1, 1]} : vector<16x128xf32> to vector<16x32xf32>
    %398 = arith.negf %397 : vector<16x32xf32>
    %399 = math.exp %398 : vector<16x32xf32>
    %cst_101 = arith.constant 1.000000e+00 : f32
    %400 = vector.broadcast %cst_101 : f32 to vector<16x32xf32>
    %401 = arith.addf %400, %399 : vector<16x32xf32>
    %402 = arith.divf %400, %401 : vector<16x32xf32>
    %403 = vector.extract_strided_slice %390 {offsets = [0, 64], sizes = [16, 32], strides = [1, 1]} : vector<16x128xf32> to vector<16x32xf32>
    %404 = math.tanh %403 : vector<16x32xf32>
    %405 = vector.extract_strided_slice %390 {offsets = [0, 96], sizes = [16, 32], strides = [1, 1]} : vector<16x128xf32> to vector<16x32xf32>
    %406 = arith.negf %405 : vector<16x32xf32>
    %407 = math.exp %406 : vector<16x32xf32>
    %cst_102 = arith.constant 1.000000e+00 : f32
    %408 = vector.broadcast %cst_102 : f32 to vector<16x32xf32>
    %409 = arith.addf %408, %407 : vector<16x32xf32>
    %410 = arith.divf %408, %409 : vector<16x32xf32>
    %411 = arith.mulf %402, %385 : vector<16x32xf32>
    %412 = arith.mulf %396, %404 : vector<16x32xf32>
    %413 = arith.addf %411, %412 : vector<16x32xf32>
    %414 = math.tanh %413 : vector<16x32xf32>
    %415 = arith.mulf %410, %414 : vector<16x32xf32>
    %416 = vector.extract_strided_slice %273 {offsets = [80, 0], sizes = [16, 128], strides = [1, 1]} : vector<128x128xf32> to vector<16x128xf32>
    %cst_103 = arith.constant dense<0.000000e+00> : vector<16x128xf32>
    %417 = tpu.matmul %415, %268, %cst_103 {dimension_numbers = #tpu.dot_dimension_numbers<[1], [0], [0], [1], [0, 0, 1, 1], [], []>} : vector<16x32xf32>, vector<32x128xf32>, vector<16x128xf32> -> vector<16x128xf32>
    %418 = arith.addf %416, %417 : vector<16x128xf32>
    %419 = vector.extract_strided_slice %418 {offsets = [0, 0], sizes = [16, 32], strides = [1, 1]} : vector<16x128xf32> to vector<16x32xf32>
    %420 = arith.negf %419 : vector<16x32xf32>
    %421 = math.exp %420 : vector<16x32xf32>
    %cst_104 = arith.constant 1.000000e+00 : f32
    %422 = vector.broadcast %cst_104 : f32 to vector<16x32xf32>
    %423 = arith.addf %422, %421 : vector<16x32xf32>
    %424 = arith.divf %422, %423 : vector<16x32xf32>
    %425 = vector.extract_strided_slice %418 {offsets = [0, 32], sizes = [16, 32], strides = [1, 1]} : vector<16x128xf32> to vector<16x32xf32>
    %426 = arith.negf %425 : vector<16x32xf32>
    %427 = math.exp %426 : vector<16x32xf32>
    %cst_105 = arith.constant 1.000000e+00 : f32
    %428 = vector.broadcast %cst_105 : f32 to vector<16x32xf32>
    %429 = arith.addf %428, %427 : vector<16x32xf32>
    %430 = arith.divf %428, %429 : vector<16x32xf32>
    %431 = vector.extract_strided_slice %418 {offsets = [0, 64], sizes = [16, 32], strides = [1, 1]} : vector<16x128xf32> to vector<16x32xf32>
    %432 = math.tanh %431 : vector<16x32xf32>
    %433 = vector.extract_strided_slice %418 {offsets = [0, 96], sizes = [16, 32], strides = [1, 1]} : vector<16x128xf32> to vector<16x32xf32>
    %434 = arith.negf %433 : vector<16x32xf32>
    %435 = math.exp %434 : vector<16x32xf32>
    %cst_106 = arith.constant 1.000000e+00 : f32
    %436 = vector.broadcast %cst_106 : f32 to vector<16x32xf32>
    %437 = arith.addf %436, %435 : vector<16x32xf32>
    %438 = arith.divf %436, %437 : vector<16x32xf32>
    %439 = arith.mulf %430, %413 : vector<16x32xf32>
    %440 = arith.mulf %424, %432 : vector<16x32xf32>
    %441 = arith.addf %439, %440 : vector<16x32xf32>
    %442 = math.tanh %441 : vector<16x32xf32>
    %443 = arith.mulf %438, %442 : vector<16x32xf32>
    %444 = vector.extract_strided_slice %273 {offsets = [96, 0], sizes = [16, 128], strides = [1, 1]} : vector<128x128xf32> to vector<16x128xf32>
    %cst_107 = arith.constant dense<0.000000e+00> : vector<16x128xf32>
    %445 = tpu.matmul %443, %268, %cst_107 {dimension_numbers = #tpu.dot_dimension_numbers<[1], [0], [0], [1], [0, 0, 1, 1], [], []>} : vector<16x32xf32>, vector<32x128xf32>, vector<16x128xf32> -> vector<16x128xf32>
    %446 = arith.addf %444, %445 : vector<16x128xf32>
    %447 = vector.extract_strided_slice %446 {offsets = [0, 0], sizes = [16, 32], strides = [1, 1]} : vector<16x128xf32> to vector<16x32xf32>
    %448 = arith.negf %447 : vector<16x32xf32>
    %449 = math.exp %448 : vector<16x32xf32>
    %cst_108 = arith.constant 1.000000e+00 : f32
    %450 = vector.broadcast %cst_108 : f32 to vector<16x32xf32>
    %451 = arith.addf %450, %449 : vector<16x32xf32>
    %452 = arith.divf %450, %451 : vector<16x32xf32>
    %453 = vector.extract_strided_slice %446 {offsets = [0, 32], sizes = [16, 32], strides = [1, 1]} : vector<16x128xf32> to vector<16x32xf32>
    %454 = arith.negf %453 : vector<16x32xf32>
    %455 = math.exp %454 : vector<16x32xf32>
    %cst_109 = arith.constant 1.000000e+00 : f32
    %456 = vector.broadcast %cst_109 : f32 to vector<16x32xf32>
    %457 = arith.addf %456, %455 : vector<16x32xf32>
    %458 = arith.divf %456, %457 : vector<16x32xf32>
    %459 = vector.extract_strided_slice %446 {offsets = [0, 64], sizes = [16, 32], strides = [1, 1]} : vector<16x128xf32> to vector<16x32xf32>
    %460 = math.tanh %459 : vector<16x32xf32>
    %461 = vector.extract_strided_slice %446 {offsets = [0, 96], sizes = [16, 32], strides = [1, 1]} : vector<16x128xf32> to vector<16x32xf32>
    %462 = arith.negf %461 : vector<16x32xf32>
    %463 = math.exp %462 : vector<16x32xf32>
    %cst_110 = arith.constant 1.000000e+00 : f32
    %464 = vector.broadcast %cst_110 : f32 to vector<16x32xf32>
    %465 = arith.addf %464, %463 : vector<16x32xf32>
    %466 = arith.divf %464, %465 : vector<16x32xf32>
    %467 = arith.mulf %458, %441 : vector<16x32xf32>
    %468 = arith.mulf %452, %460 : vector<16x32xf32>
    %469 = arith.addf %467, %468 : vector<16x32xf32>
    %470 = math.tanh %469 : vector<16x32xf32>
    %471 = arith.mulf %466, %470 : vector<16x32xf32>
    %472 = vector.extract_strided_slice %273 {offsets = [112, 0], sizes = [16, 128], strides = [1, 1]} : vector<128x128xf32> to vector<16x128xf32>
    %cst_111 = arith.constant dense<0.000000e+00> : vector<16x128xf32>
    %473 = tpu.matmul %471, %268, %cst_111 {dimension_numbers = #tpu.dot_dimension_numbers<[1], [0], [0], [1], [0, 0, 1, 1], [], []>} : vector<16x32xf32>, vector<32x128xf32>, vector<16x128xf32> -> vector<16x128xf32>
    %474 = arith.addf %472, %473 : vector<16x128xf32>
    %475 = vector.extract_strided_slice %474 {offsets = [0, 0], sizes = [16, 32], strides = [1, 1]} : vector<16x128xf32> to vector<16x32xf32>
    %476 = arith.negf %475 : vector<16x32xf32>
    %477 = math.exp %476 : vector<16x32xf32>
    %cst_112 = arith.constant 1.000000e+00 : f32
    %478 = vector.broadcast %cst_112 : f32 to vector<16x32xf32>
    %479 = arith.addf %478, %477 : vector<16x32xf32>
    %480 = arith.divf %478, %479 : vector<16x32xf32>
    %481 = vector.extract_strided_slice %474 {offsets = [0, 32], sizes = [16, 32], strides = [1, 1]} : vector<16x128xf32> to vector<16x32xf32>
    %482 = arith.negf %481 : vector<16x32xf32>
    %483 = math.exp %482 : vector<16x32xf32>
    %cst_113 = arith.constant 1.000000e+00 : f32
    %484 = vector.broadcast %cst_113 : f32 to vector<16x32xf32>
    %485 = arith.addf %484, %483 : vector<16x32xf32>
    %486 = arith.divf %484, %485 : vector<16x32xf32>
    %487 = vector.extract_strided_slice %474 {offsets = [0, 64], sizes = [16, 32], strides = [1, 1]} : vector<16x128xf32> to vector<16x32xf32>
    %488 = math.tanh %487 : vector<16x32xf32>
    %489 = arith.mulf %486, %469 : vector<16x32xf32>
    %490 = arith.mulf %480, %488 : vector<16x32xf32>
    %491 = arith.addf %489, %490 : vector<16x32xf32>
    %492 = vector.extract_strided_slice %491 {offsets = [0, 0], sizes = [2, 32], strides = [1, 1]} : vector<16x32xf32> to vector<2x32xf32>
    %493 = vector.extract_strided_slice %491 {offsets = [8, 0], sizes = [2, 32], strides = [1, 1]} : vector<16x32xf32> to vector<2x32xf32>
    %c0_114 = arith.constant 0 : index
    %c0_115 = arith.constant 0 : index
    %494 = vector.load %arg5[%c0_114, %c0_115] : memref<32x32xf32, #tpu.memory_space<vmem>>, vector<32x32xf32>
    %cst_116 = arith.constant dense<0.000000e+00> : vector<2x32xf32>
    %495 = tpu.matmul %492, %494, %cst_116 {dimension_numbers = #tpu.dot_dimension_numbers<[1], [0], [0], [1], [0, 0, 1, 1], [], []>} : vector<2x32xf32>, vector<32x32xf32>, vector<2x32xf32> -> vector<2x32xf32>
    %c0_117 = arith.constant 0 : index
    %c0_118 = arith.constant 0 : index
    %496 = vector.load %arg6[%c0_117, %c0_118] : memref<32x32xf32, #tpu.memory_space<vmem>>, vector<32x32xf32>
    %cst_119 = arith.constant dense<0.000000e+00> : vector<2x32xf32>
    %497 = tpu.matmul %493, %496, %cst_119 {dimension_numbers = #tpu.dot_dimension_numbers<[1], [0], [0], [1], [0, 0, 1, 1], [], []>} : vector<2x32xf32>, vector<32x32xf32>, vector<2x32xf32> -> vector<2x32xf32>
    %498 = arith.addf %495, %497 : vector<2x32xf32>
    %c0_120 = arith.constant 0 : index
    %c0_121 = arith.constant 0 : index
    %499 = vector.load %arg7[%c0_120, %c0_121] : memref<1x32xf32, #tpu.memory_space<vmem>>, vector<1x32xf32>
    %500 = vector.broadcast %499 : vector<1x32xf32> to vector<2x32xf32>
    %501 = arith.addf %498, %500 : vector<2x32xf32>
    %cst_122 = arith.constant 0.000000e+00 : f32
    %502 = vector.broadcast %cst_122 : f32 to vector<2x32xf32>
    %503 = arith.maximumf %501, %502 : vector<2x32xf32>
    %c0_123 = arith.constant 0 : index
    %c0_124 = arith.constant 0 : index
    %504 = vector.load %arg8[%c0_123, %c0_124] : memref<32x3xf32, #tpu.memory_space<vmem>>, vector<32x3xf32>
    %cst_125 = arith.constant dense<0.000000e+00> : vector<2x3xf32>
    %505 = tpu.matmul %503, %504, %cst_125 {dimension_numbers = #tpu.dot_dimension_numbers<[1], [0], [0], [1], [0, 0, 1, 1], [], []>} : vector<2x32xf32>, vector<32x3xf32>, vector<2x3xf32> -> vector<2x3xf32>
    %c0_126 = arith.constant 0 : index
    %c0_127 = arith.constant 0 : index
    %506 = vector.load %arg9[%c0_126, %c0_127] : memref<1x3xf32, #tpu.memory_space<vmem>>, vector<1x3xf32>
    %507 = vector.broadcast %506 : vector<1x3xf32> to vector<2x3xf32>
    %508 = arith.addf %505, %507 : vector<2x3xf32>
    %c1_128 = arith.constant 1 : index
    %c0_129 = arith.constant 0 : index
    %c0_130 = arith.constant 0 : index
    %509 = vector.load %arg10[%c1_128, %c0_129, %c0_130] : memref<2x2x3xf32, #tpu.memory_space<vmem>>, vector<1x2x3xf32>
    %510 = vector.shape_cast %509 : vector<1x2x3xf32> to vector<2x3xf32>
    %511 = vector.shape_cast %508 : vector<2x3xf32> to vector<1x2x3xf32>
    tpu.vector_store %arg10[%c1_128, %c0_129, %c0_130], %511 {strides = array<i32>} : memref<2x2x3xf32, #tpu.memory_space<vmem>>, vector<1x2x3xf32>,
    return
  }
  func.func @transform_0(%arg0: i32) -> (i32, i32) {
    %c0_i32 = arith.constant 0 : i32
    %c0_i32_0 = arith.constant 0 : i32
    %c0_i32_1 = arith.constant 0 : i32
    return %c0_i32, %c0_i32_0 : i32, i32
  }
  func.func @transform_1(%arg0: i32) -> (i32, i32, i32) {
    %c0_i32 = arith.constant 0 : i32
    %c0_i32_0 = arith.constant 0 : i32
    %c0_i32_1 = arith.constant 0 : i32
    %c0_i32_2 = arith.constant 0 : i32
    return %c0_i32, %c0_i32_0, %c0_i32_1 : i32, i32, i32
  }
  func.func @transform_2(%arg0: i32) -> (i32, i32, i32) {
    %c0_i32 = arith.constant 0 : i32
    %c0_i32_0 = arith.constant 0 : i32
    %c0_i32_1 = arith.constant 0 : i32
    %c0_i32_2 = arith.constant 0 : i32
    return %c0_i32, %c0_i32_0, %c0_i32_1 : i32, i32, i32
  }
  func.func @transform_3(%arg0: i32) -> (i32, i32, i32) {
    %c0_i32 = arith.constant 0 : i32
    %c0_i32_0 = arith.constant 0 : i32
    %c0_i32_1 = arith.constant 0 : i32
    %c0_i32_2 = arith.constant 0 : i32
    return %c0_i32, %c0_i32_0, %c0_i32_1 : i32, i32, i32
  }
  func.func @transform_4(%arg0: i32) -> (i32, i32) {
    %c0_i32 = arith.constant 0 : i32
    %c0_i32_0 = arith.constant 0 : i32
    %c0_i32_1 = arith.constant 0 : i32
    return %c0_i32, %c0_i32_0 : i32, i32
  }
  func.func @transform_5(%arg0: i32) -> (i32, i32) {
    %c0_i32 = arith.constant 0 : i32
    %c0_i32_0 = arith.constant 0 : i32
    %c0_i32_1 = arith.constant 0 : i32
    return %c0_i32, %c0_i32_0 : i32, i32
  }
  func.func @transform_6(%arg0: i32) -> (i32, i32) {
    %c0_i32 = arith.constant 0 : i32
    %c0_i32_0 = arith.constant 0 : i32
    %c0_i32_1 = arith.constant 0 : i32
    return %c0_i32, %c0_i32_0 : i32, i32
  }
  func.func @transform_7(%arg0: i32) -> (i32, i32) {
    %c0_i32 = arith.constant 0 : i32
    %c0_i32_0 = arith.constant 0 : i32
    %c0_i32_1 = arith.constant 0 : i32
    return %c0_i32, %c0_i32_0 : i32, i32
  }
  func.func @transform_8(%arg0: i32) -> (i32, i32) {
    %c0_i32 = arith.constant 0 : i32
    %c0_i32_0 = arith.constant 0 : i32
    %c0_i32_1 = arith.constant 0 : i32
    return %c0_i32, %c0_i32_0 : i32, i32
  }
  func.func @transform_9(%arg0: i32) -> (i32, i32, i32) {
    %c0_i32 = arith.constant 0 : i32
    %c0_i32_0 = arith.constant 0 : i32
    %c0_i32_1 = arith.constant 0 : i32
    %c0_i32_2 = arith.constant 0 : i32
    return %c0_i32, %c0_i32_0, %c0_i32_1 : i32, i32, i32
  }
}

</mosaic_0001>

<bundles_post_ra>
// kernel: _forward.1
= control target key start
LH: loop header
LB: loop body
LE: loop exit
PB: predicated region body
PF: predicated region fallthrough
CT: control target
= control target key end

     0   :  { %vm64_vm0 = vcmask 261120   ;;  %s4885_s0 = inlined_call_operand.vmem [shape: f32[128,32], index: 0, kind: input, shape index: {}]   ;;  %s4886_s1 = inlined_call_operand.vmem [shape: f32[2,32,128], index: 1, kind: input, shape index: {}]   ;;  %s4887_s2 = inlined_call_operand.vmem [shape: f32[2,32,128], index: 2, kind: input, shape index: {}]   ;;  %s4888_s3 = inlined_call_operand.vmem [shape: f32[2,1,128], index: 3, kind: input, shape index: {}]   ;;  %s4889_s4 = inlined_call_operand.vmem [shape: f32[32,32], index: 4, kind: input, shape index: {}]   ;;  %s4890_s5 = inlined_call_operand.vmem [shape: f32[32,32], index: 5, kind: input, shape index: {}]   ;;  %s4891_s6 = inlined_call_operand.vmem [shape: f32[1,32], index: 6, kind: input, shape index: {}]   ;;  %s4892_s7 = inlined_call_operand.vmem [shape: f32[32,3], index: 7, kind: input, shape index: {}]   ;;  %s4893_s8 = inlined_call_operand.vmem [shape: f32[1,3], index: 8, kind: input, shape index: {}]   ;;  %s4894_s9 = inlined_call_operand.hbm [shape: f32[2,2,3], index: 9, kind: output, shape index: {}]  }
   0x1   :  { %v49_v0 = vld [vmem:[%s4886_s1] sm:$0xff]  ;;  %v50_v1 = vld [vmem:[%s4886_s1 + $0x8] sm:$0xff]  ;;  %v51_v2 = vld [vmem:[%s4886_s1 + $0x10] sm:$0xff] }
   0x2   :  { %v3761_v3 = vpack.c.bf16 %v50_v1, %v49_v0  ;;  %v52_v4 = vld [vmem:[%s4886_s1 + $0x18] sm:$0xff]  ;;  %v33_v5 = vld [vmem:[%s4885_s0] sm:$0xff]  ;;  %v54_v8 = vld [vmem:[%s4887_s2 + $0x8] sm:$0xff] }
   0x3   :  { %v3765_v6 = vpack.c.bf16 %v52_v4, %v51_v2  ;;  %3463 = vmatprep.mubr.msk.f32.mxu0 %vm64_vm0, %v33_v5  ;;  %v53_v7 = vld [vmem:[%s4887_s2] sm:$0xff]  ;;  %v55_v10 = vld [vmem:[%s4887_s2 + $0x10] sm:$0xff]  ;;  %v56_v11 = vld [vmem:[%s4887_s2 + $0x18] sm:$0xff] }
   0x4   :  { %3762 = vmatprep.subr.bf16.mxu0 %v3761_v3  ;;  %v4369_v9 = vpack.c.bf16 %v54_v8, %v53_v7  ;;  %v34_v12 = vld [vmem:[%s4885_s0 + $0x8] sm:$0xff] }
   0x5   :  { %3764 = vmatpush3.bf16.msra.mxu0 %v3761_v3 }
   0x6   :  { %3766 = vmatprep.subr.bf16.mxu0 %v3765_v6 }
   0x9   :  { %3768 = vmatpush3.bf16.msra.mxu0 %v3765_v6 }
   0xa   :  { %14 = vsyncpa [#allocation4], 0  ;;  %3770 = vmatprep.subr.bf16.mxu0 %v4369_v9  ;;  %v35_v13 = vld [vmem:[%s4885_s0 + $0x10] sm:$0xff]  ;;  %v4384_v14 = vpack.c.bf16 %v56_v11, %v55_v10  ;;  %v36_v15 = vld [vmem:[%s4885_s0 + $0x18] sm:$0xff]  ;;  %v4289_v28 = vmov 0.0   ;;  %s4291_s17 = smov 32  }
   0xb   :  { %v37_v16 = vld [vmem:[%s4885_s0 + $0x20] sm:$0xff]  ;;  %v38_v17 = vld [vmem:[%s4885_s0 + $0x28] sm:$0xff]  ;;  %v39_v18 = vld [vmem:[%s4885_s0 + $0x30] sm:$0xff]  ;;  %vm4293_vm1 = vmmov 0   ;;  %vm1620_vm2 = vcmask 17408  }
   0xc   :  { %3464 = vmatmul.mubr.msk.f32.vlgmr.msra.gmra.mrb[0].mxu0 %vm64_vm0, %v34_v12  ;;  %v40_v19 = vld [vmem:[%s4885_s0 + $0x38] sm:$0xff]  ;;  %v41_v20 = vld [vmem:[%s4885_s0 + $0x40] sm:$0xff]  ;;  %v42_v21 = vld [vmem:[%s4885_s0 + $0x48] sm:$0xff]  ;;  %3583 = vmatprep.mubr.msk.f32.mxu1 %vm4293_vm1, %v4289_v28 }
   0xd   :  { %3772 = vmatpush3.bf16.msra.mxu0 %v4369_v9  ;;  %3466 = vmatprep.mubr.msk.f32.mxu0 %vm64_vm0, %v35_v13  ;;  %v43_v22 = vld [vmem:[%s4885_s0 + $0x50] sm:$0xff]  ;;  %v44_v23 = vld [vmem:[%s4885_s0 + $0x58] sm:$0xff]  ;;  %v45_v24 = vld [vmem:[%s4885_s0 + $0x60] sm:$0xff] }
   0xe   :  { %3774 = vmatprep.subr.bf16.mxu0 %v4384_v14  ;;  %v46_v25 = vld [vmem:[%s4885_s0 + $0x68] sm:$0xff]  ;;  %v47_v26 = vld [vmem:[%s4885_s0 + $0x70] sm:$0xff]  ;;  %v48_v27 = vld [vmem:[%s4885_s0 + $0x78] sm:$0xff]  ;;  %s4290_s0 = smov 64  }
   0xf   :  { %v4453_v29 = vld [vmem:[%s4888_s3] ss:$0 sm:$0xff] }
  0x10   :  { %3467 = vmatmul.mubr.msk.f32.gmra.mrb[2].mxu0 %vm64_vm0, %v36_v15 }
  0x11   :  { %3469 = vmatprep.mubr.msk.f32.mxu0 %vm64_vm0, %v37_v16  ;;  %3776 = vmatpush3.bf16.msra.mxu0 %v4384_v14 }
  0x12   :  { %3778 = vmatprep.subr.bf16.mxu0 %v4369_v9 }
  0x14   :  { %3470 = vmatmul.mubr.msk.f32.gmra.mrb[4].mxu0 %vm64_vm0, %v38_v17 }
  0x15   :  { %3472 = vmatprep.mubr.msk.f32.mxu0 %vm64_vm0, %v39_v18 }
  0x18   :  { %3473 = vmatmul.mubr.msk.f32.gmra.mrb[6].mxu0 %vm64_vm0, %v40_v19 }
  0x19   :  { %3475 = vmatprep.mubr.msk.f32.mxu0 %vm64_vm0, %v41_v20 }
  0x1c   :  { %3476 = vmatmul.mubr.msk.f32.gmra.mrb[8].mxu0 %vm64_vm0, %v42_v21 }
  0x1d   :  { %3478 = vmatprep.mubr.msk.f32.mxu0 %vm64_vm0, %v43_v22 }
  0x20   :  { %3479 = vmatmul.mubr.msk.f32.gmra.mrb[10].mxu0 %vm64_vm0, %v44_v23 }
  0x21   :  { %3481 = vmatprep.mubr.msk.f32.mxu0 %vm64_vm0, %v45_v24 }
  0x24   :  { %3482 = vmatmul.mubr.msk.f32.gmra.mrb[12].mxu0 %vm64_vm0, %v46_v25 }
  0x25   :  { %3484 = vmatprep.mubr.msk.f32.mxu0 %vm64_vm0, %v47_v26 }
  0x28   :  { %3485 = vmatmul.mubr.msk.f32.gmra.mrb[14].mxu0 %vm64_vm0, %v48_v27 }
  0x29   :  { %3495 = vmatprep.mubr.f32.mxu0 %v4289_v28 }
  0x2c   :  { %3496 = vmatmul.mubr.f32.vlgmr.msra.gmra.mrb[0].mxu0 %v4289_v28 }
  0x2d   :  { %3780 = vmatpush3.bf16.msra.mxu0 %v4369_v9 }
  0x2e   :  { %3782 = vmatprep.subr.bf16.mxu0 %v4384_v14 }
  0x31   :  { %3784 = vmatpush3.bf16.msra.mxu0 %v4384_v14 }
  0x32   :  { %3786 = vmatprep.subr.bf16.mxu0 %v4369_v9 }
  0xff   :  { %v3497_v30 = vpop.f32.mrb[0].mxu0 }
 0x100   :  { %v327_v31 = vpop.f32.mrb[1].mxu0  ;;  %v3941_v33 = vadd.f32 %v3497_v30, %v4453_v29 }
 0x101   :  { %v3942_v32 = vadd.f32 %v4453_v29, %v327_v31 }
 0x102   :  { %v3194_v37 = vmul.f32 -1.442695, %v3941_v33 }
 0x103   :  { %4013 = vtanh.f32 %v3942_v32  ;;  %v3193_v36 = vmul.f32 -1.442695, %v3942_v32 }
 0x104   :  { %4015 = vtanh.f32 %v3941_v33 }
 0x105   :  { %4017 = vpow2.f32 %v3193_v36 }
 0x106   :  { %4019 = vpow2.f32 %v3194_v37 }
 0x10d   :  { %v4014_v34 = vpop.eup %4013 }
 0x10e   :  { %356 = vrot.lane.b32.xlu0 %v4014_v34, %s4290_s0  ;;  %v4016_v35 = vpop.eup %4015 }
 0x10f   :  { %v4018_v38 = vpop.eup %4017 }
 0x110   :  { %v344_v39 = vadd.f32 1.0, %v4018_v38  ;;  %v4020_v40 = vpop.eup %4019 }
 0x111   :  { %v345_v41 = vadd.f32 1.0, %v4020_v40 }
 0x112   :  { %358 = vrot.lane.b32.xlu0 %v4016_v35, %s4290_s0  ;;  %4021 = vrcp.f32 %v344_v39 }
 0x113   :  { %4023 = vrcp.f32 %v345_v41 }
 0x11c   :  { %v4022_v42 = vpop.eup %4021 }
 0x11d   :  { %v4024_v45 = vpop.eup %4023  ;;  %v352_v48 = vmul.f32 0.0, %v4022_v42 }
 0x11e   :  { %v353_v51 = vmul.f32 0.0, %v4024_v45 }
 0x180   :  { %v357_v43 = vpop.permute.xlu0 %356 }
 0x181   :  { %v362_v44 = vmul.f32 %v4022_v42, %v357_v43 }
 0x183   :  { %366 = vrot.lane.b32.xlu1 %v362_v44, %s4291_s17 }
 0x184   :  { %v359_v46 = vpop.permute.xlu0 %358 }
 0x185   :  { %v363_v47 = vmul.f32 %v4024_v45, %v359_v46 }
 0x187   :  { %368 = vrot.lane.b32.xlu1 %v363_v47, %s4291_s17 }
 0x1f5   :  { %v367_v49 = vpop.permute.xlu1 %366 }
 0x1f6   :  { %v372_v50 = vadd.f32 %v367_v49, %v352_v48 }
 0x1f8   :  { %4025 = vtanh.f32 %v372_v50 }
 0x1f9   :  { %v369_v52 = vpop.permute.xlu1 %368 }
 0x1fa   :  { %v373_v53 = vadd.f32 %v369_v52, %v353_v51 }
 0x1fc   :  { %4027 = vtanh.f32 %v373_v53 }
 0x202   :  { %v4026_v54 = vpop.eup %4025 }
 0x203   :  { %378 = vrot.lane.b32.xlu0 %v4026_v54, %s4290_s0 }
 0x206   :  { %v4028_v55 = vpop.eup %4027 }
 0x207   :  { %380 = vrot.lane.b32.xlu1 %v4028_v55, %s4290_s0 }
 0x275   :  { %v379_v56 = vpop.permute.xlu0 %378 }
 0x276   :  { %v384_v57 = vmul.f32 %v4022_v42, %v379_v56 }
 0x278   :  { %388 = vrot.lane.b32.xlu0 %v384_v57, %s4291_s17 }
 0x279   :  { %v381_v58 = vpop.permute.xlu1 %380 }
 0x27a   :  { %v385_v59 = vmul.f32 %v4024_v45, %v381_v58 }
 0x27c   :  { %390 = vrot.lane.b32.xlu1 %v385_v59, %s4291_s17 }
 0x2ea   :  { %v389_v60 = vpop.permute.xlu0 %388 }
 0x2eb   :  { %394 = vst.msk [vmem:[#allocation2] sm:$0xff] %vm64_vm0, %v389_v60  ;;  %3506 = vmatprep.mubr.msk.f32.mxu0 %vm64_vm0, %v389_v60 }
 0x2ee   :  { %v391_v61 = vpop.permute.xlu1 %390 }
 0x2ef   :  { %395 = vst.msk [vmem:[#allocation2 + $0x8] sm:$0xff] %vm64_vm0, %v391_v61  ;;  %3507 = vmatmul.mubr.msk.f32.vlgmr.msra.gmra.mrb[2].mxu0 %vm64_vm0, %v391_v61 }
 0x2f0   :  { %3788 = vmatpush3.bf16.msra.mxu0 %v4369_v9 }
 0x2f1   :  { %3790 = vmatprep.subr.bf16.mxu0 %v4384_v14 }
 0x2f4   :  { %3792 = vmatpush3.bf16.msra.mxu0 %v4384_v14 }
 0x2f5   :  { %3794 = vmatprep.subr.bf16.mxu0 %v4369_v9 }
 0x3c2   :  { %v3508_v62 = vpop.f32.mrb[2].mxu0 }
 0x3c3   :  { %v3943_v63 = vadd.f32 %v3508_v62, %v4453_v29  ;;  %v466_v0 = vpop.f32.mrb[3].mxu0 }
 0x3c4   :  { %v3944_v1 = vadd.f32 %v4453_v29, %v466_v0 }
 0x3c5   :  { %4029 = vtanh.f32 %v3943_v63  ;;  %v3198_v4 = vmul.f32 -1.442695, %v3943_v63 }
 0x3c6   :  { %4031 = vtanh.f32 %v3944_v1  ;;  %v3197_v5 = vmul.f32 -1.442695, %v3944_v1 }
 0x3c7   :  { %4033 = vpow2.f32 %v3198_v4 }
 0x3c8   :  { %4035 = vpow2.f32 %v3197_v5 }
 0x3cf   :  { %v4030_v2 = vpop.eup %4029 }
 0x3d0   :  { %v4032_v3 = vpop.eup %4031  ;;  %497 = vrot.lane.b32.xlu1 %v4030_v2, %s4290_s0 }
 0x3d1   :  { %495 = vrot.lane.b32.xlu0 %v4032_v3, %s4290_s0  ;;  %v4034_v6 = vpop.eup %4033 }
 0x3d2   :  { %v4036_v7 = vpop.eup %4035  ;;  %v484_v8 = vadd.f32 1.0, %v4034_v6 }
 0x3d3   :  { %v483_v10 = vadd.f32 1.0, %v4036_v7 }
 0x3d4   :  { %4037 = vrcp.f32 %v484_v8 }
 0x3d5   :  { %4039 = vrcp.f32 %v483_v10 }
 0x3de   :  { %v4038_v11 = vpop.eup %4037 }
 0x3df   :  { %v4040_v13 = vpop.eup %4039  ;;  %v492_v18 = vmul.f32 %v4038_v11, %v373_v53 }
 0x3e0   :  { %v491_v20 = vmul.f32 %v4040_v13, %v372_v50 }
 0x442   :  { %v498_v12 = vpop.permute.xlu1 %497 }
 0x443   :  { %v502_v15 = vmul.f32 %v4038_v11, %v498_v12  ;;  %v496_v16 = vpop.permute.xlu0 %495 }
 0x444   :  { %v501_v17 = vmul.f32 %v4040_v13, %v496_v16 }
 0x445   :  { %507 = vrot.lane.b32.xlu1 %v502_v15, %s4291_s17 }
 0x446   :  { %505 = vrot.lane.b32.xlu0 %v501_v17, %s4291_s17 }
 0x4b7   :  { %v508_v19 = vpop.permute.xlu1 %507 }
 0x4b8   :  { %v512_v21 = vadd.f32 %v508_v19, %v492_v18  ;;  %v506_v22 = vpop.permute.xlu0 %505 }
 0x4b9   :  { %v511_v23 = vadd.f32 %v506_v22, %v491_v20 }
 0x4ba   :  { %4041 = vtanh.f32 %v512_v21 }
 0x4bb   :  { %4043 = vtanh.f32 %v511_v23 }
 0x4c4   :  { %v4042_v24 = vpop.eup %4041 }
 0x4c5   :  { %v4044_v25 = vpop.eup %4043  ;;  %519 = vrot.lane.b32.xlu1 %v4042_v24, %s4290_s0 }
 0x4c6   :  { %517 = vrot.lane.b32.xlu0 %v4044_v25, %s4290_s0 }
 0x537   :  { %v520_v26 = vpop.permute.xlu1 %519 }
 0x538   :  { %v524_v27 = vmul.f32 %v4038_v11, %v520_v26  ;;  %v518_v30 = vpop.permute.xlu0 %517 }
 0x539   :  { %v523_v31 = vmul.f32 %v4040_v13, %v518_v30 }
 0x53a   :  { %529 = vrot.lane.b32.xlu1 %v524_v27, %s4291_s17 }
 0x53b   :  { %527 = vrot.lane.b32.xlu0 %v523_v31, %s4291_s17 }
 0x5ac   :  { %v530_v32 = vpop.permute.xlu1 %529 }
 0x5ad   :  { %534 = vst.msk [vmem:[#allocation2 + $0x18] sm:$0xff] %vm64_vm0, %v530_v32  ;;  %v528_v33 = vpop.permute.xlu0 %527 }
 0x5ae   :  { %533 = vst.msk [vmem:[#allocation2 + $0x10] sm:$0xff] %vm64_vm0, %v528_v33  ;;  %3517 = vmatprep.mubr.msk.f32.mxu0 %vm64_vm0, %v528_v33 }
 0x5af   :  { %3518 = vmatmul.mubr.msk.f32.vlgmr.msra.gmra.mrb[4].mxu0 %vm64_vm0, %v530_v32 }
 0x5b0   :  { %3796 = vmatpush3.bf16.msra.mxu0 %v4369_v9 }
 0x5b1   :  { %3798 = vmatprep.subr.bf16.mxu0 %v4384_v14 }
 0x5b4   :  { %3800 = vmatpush3.bf16.msra.mxu0 %v4384_v14 }
 0x5b5   :  { %3802 = vmatprep.subr.bf16.mxu0 %v4369_v9 }
 0x682   :  { %v3519_v34 = vpop.f32.mrb[4].mxu0 }
 0x683   :  { %v3945_v35 = vadd.f32 %v3519_v34, %v4453_v29  ;;  %v605_v36 = vpop.f32.mrb[5].mxu0 }
 0x684   :  { %v3946_v37 = vadd.f32 %v4453_v29, %v605_v36 }
 0x685   :  { %4045 = vtanh.f32 %v3945_v35  ;;  %v3202_v40 = vmul.f32 -1.442695, %v3945_v35 }
 0x686   :  { %4047 = vtanh.f32 %v3946_v37  ;;  %v3201_v41 = vmul.f32 -1.442695, %v3946_v37 }
 0x687   :  { %4049 = vpow2.f32 %v3202_v40 }
 0x688   :  { %4051 = vpow2.f32 %v3201_v41 }
 0x68f   :  { %v4046_v38 = vpop.eup %4045 }
 0x690   :  { %v4048_v39 = vpop.eup %4047  ;;  %636 = vrot.lane.b32.xlu1 %v4046_v38, %s4290_s0 }
 0x691   :  { %634 = vrot.lane.b32.xlu0 %v4048_v39, %s4290_s0  ;;  %v4050_v42 = vpop.eup %4049 }
 0x692   :  { %v4052_v43 = vpop.eup %4051  ;;  %v623_v44 = vadd.f32 1.0, %v4050_v42 }
 0x693   :  { %v622_v45 = vadd.f32 1.0, %v4052_v43 }
 0x694   :  { %4053 = vrcp.f32 %v623_v44 }
 0x695   :  { %4055 = vrcp.f32 %v622_v45 }
 0x69e   :  { %v4054_v46 = vpop.eup %4053 }
 0x69f   :  { %v4056_v48 = vpop.eup %4055  ;;  %v631_v52 = vmul.f32 %v4054_v46, %v512_v21 }
 0x6a0   :  { %v630_v54 = vmul.f32 %v4056_v48, %v511_v23 }
 0x702   :  { %v637_v47 = vpop.permute.xlu1 %636 }
 0x703   :  { %v641_v49 = vmul.f32 %v4054_v46, %v637_v47  ;;  %v635_v50 = vpop.permute.xlu0 %634 }
 0x704   :  { %v640_v51 = vmul.f32 %v4056_v48, %v635_v50 }
 0x705   :  { %646 = vrot.lane.b32.xlu1 %v641_v49, %s4291_s17 }
 0x706   :  { %644 = vrot.lane.b32.xlu0 %v640_v51, %s4291_s17 }
 0x777   :  { %v647_v53 = vpop.permute.xlu1 %646 }
 0x778   :  { %v651_v55 = vadd.f32 %v647_v53, %v631_v52  ;;  %v645_v56 = vpop.permute.xlu0 %644 }
 0x779   :  { %v650_v57 = vadd.f32 %v645_v56, %v630_v54 }
 0x77a   :  { %4057 = vtanh.f32 %v651_v55 }
 0x77b   :  { %4059 = vtanh.f32 %v650_v57 }
 0x784   :  { %v4058_v58 = vpop.eup %4057 }
 0x785   :  { %v4060_v59 = vpop.eup %4059  ;;  %658 = vrot.lane.b32.xlu1 %v4058_v58, %s4290_s0 }
 0x786   :  { %656 = vrot.lane.b32.xlu0 %v4060_v59, %s4290_s0 }
 0x7f7   :  { %v659_v60 = vpop.permute.xlu1 %658 }
 0x7f8   :  { %v663_v61 = vmul.f32 %v4054_v46, %v659_v60  ;;  %v657_v62 = vpop.permute.xlu0 %656 }
 0x7f9   :  { %v662_v63 = vmul.f32 %v4056_v48, %v657_v62 }
 0x7fa   :  { %668 = vrot.lane.b32.xlu1 %v663_v61, %s4291_s17 }
 0x7fb   :  { %666 = vrot.lane.b32.xlu0 %v662_v63, %s4291_s17 }
 0x86c   :  { %v669_v0 = vpop.permute.xlu1 %668 }
 0x86d   :  { %673 = vst.msk [vmem:[#allocation2 + $0x28] sm:$0xff] %vm64_vm0, %v669_v0  ;;  %v667_v1 = vpop.permute.xlu0 %666 }
 0x86e   :  { %672 = vst.msk [vmem:[#allocation2 + $0x20] sm:$0xff] %vm64_vm0, %v667_v1  ;;  %3528 = vmatprep.mubr.msk.f32.mxu0 %vm64_vm0, %v667_v1 }
 0x86f   :  { %3529 = vmatmul.mubr.msk.f32.vlgmr.msra.gmra.mrb[6].mxu0 %vm64_vm0, %v669_v0 }
 0x870   :  { %3804 = vmatpush3.bf16.msra.mxu0 %v4369_v9 }
 0x871   :  { %3806 = vmatprep.subr.bf16.mxu0 %v4384_v14 }
 0x874   :  { %3808 = vmatpush3.bf16.msra.mxu0 %v4384_v14 }
 0x875   :  { %3810 = vmatprep.subr.bf16.mxu0 %v4369_v9 }
 0x942   :  { %v3530_v2 = vpop.f32.mrb[6].mxu0 }
 0x943   :  { %v3947_v3 = vadd.f32 %v3530_v2, %v4453_v29  ;;  %v744_v4 = vpop.f32.mrb[7].mxu0 }
 0x944   :  { %v3948_v5 = vadd.f32 %v4453_v29, %v744_v4 }
 0x945   :  { %4061 = vtanh.f32 %v3947_v3  ;;  %v3206_v8 = vmul.f32 -1.442695, %v3947_v3 }
 0x946   :  { %4063 = vtanh.f32 %v3948_v5  ;;  %v3205_v10 = vmul.f32 -1.442695, %v3948_v5 }
 0x947   :  { %4065 = vpow2.f32 %v3206_v8 }
 0x948   :  { %4067 = vpow2.f32 %v3205_v10 }
 0x94f   :  { %v4062_v6 = vpop.eup %4061 }
 0x950   :  { %v4064_v7 = vpop.eup %4063  ;;  %775 = vrot.lane.b32.xlu1 %v4062_v6, %s4290_s0 }
 0x951   :  { %773 = vrot.lane.b32.xlu0 %v4064_v7, %s4290_s0  ;;  %v4066_v11 = vpop.eup %4065 }
 0x952   :  { %v4068_v12 = vpop.eup %4067  ;;  %v762_v13 = vadd.f32 1.0, %v4066_v11 }
 0x953   :  { %v761_v15 = vadd.f32 1.0, %v4068_v12 }
 0x954   :  { %4069 = vrcp.f32 %v762_v13 }
 0x955   :  { %4071 = vrcp.f32 %v761_v15 }
 0x95e   :  { %v4070_v16 = vpop.eup %4069 }
 0x95f   :  { %v4072_v18 = vpop.eup %4071  ;;  %v770_v22 = vmul.f32 %v4070_v16, %v651_v55 }
 0x960   :  { %v769_v24 = vmul.f32 %v4072_v18, %v650_v57 }
 0x9c2   :  { %v776_v17 = vpop.permute.xlu1 %775 }
 0x9c3   :  { %v780_v19 = vmul.f32 %v4070_v16, %v776_v17  ;;  %v774_v20 = vpop.permute.xlu0 %773 }
 0x9c4   :  { %v779_v21 = vmul.f32 %v4072_v18, %v774_v20 }
 0x9c5   :  { %785 = vrot.lane.b32.xlu1 %v780_v19, %s4291_s17 }
 0x9c6   :  { %783 = vrot.lane.b32.xlu0 %v779_v21, %s4291_s17 }
 0xa37   :  { %v786_v23 = vpop.permute.xlu1 %785 }
 0xa38   :  { %v790_v25 = vadd.f32 %v786_v23, %v770_v22  ;;  %v784_v26 = vpop.permute.xlu0 %783 }
 0xa39   :  { %v789_v27 = vadd.f32 %v784_v26, %v769_v24 }
 0xa3a   :  { %4073 = vtanh.f32 %v790_v25 }
 0xa3b   :  { %4075 = vtanh.f32 %v789_v27 }
 0xa44   :  { %v4074_v30 = vpop.eup %4073 }
 0xa45   :  { %v4076_v31 = vpop.eup %4075  ;;  %797 = vrot.lane.b32.xlu1 %v4074_v30, %s4290_s0 }
 0xa46   :  { %795 = vrot.lane.b32.xlu0 %v4076_v31, %s4290_s0 }
 0xab7   :  { %v798_v32 = vpop.permute.xlu1 %797 }
 0xab8   :  { %v802_v33 = vmul.f32 %v4070_v16, %v798_v32  ;;  %v796_v34 = vpop.permute.xlu0 %795 }
 0xab9   :  { %v801_v35 = vmul.f32 %v4072_v18, %v796_v34 }
 0xaba   :  { %807 = vrot.lane.b32.xlu1 %v802_v33, %s4291_s17 }
 0xabb   :  { %805 = vrot.lane.b32.xlu0 %v801_v35, %s4291_s17 }
 0xb2c   :  { %v808_v36 = vpop.permute.xlu1 %807 }
 0xb2d   :  { %812 = vst.msk [vmem:[#allocation2 + $0x38] sm:$0xff] %vm64_vm0, %v808_v36  ;;  %v806_v37 = vpop.permute.xlu0 %805 }
 0xb2e   :  { %811 = vst.msk [vmem:[#allocation2 + $0x30] sm:$0xff] %vm64_vm0, %v806_v37  ;;  %3539 = vmatprep.mubr.msk.f32.mxu0 %vm64_vm0, %v806_v37 }
 0xb2f   :  { %3540 = vmatmul.mubr.msk.f32.vlgmr.msra.gmra.mrb[8].mxu0 %vm64_vm0, %v808_v36 }
 0xb30   :  { %3812 = vmatpush3.bf16.msra.mxu0 %v4369_v9 }
 0xb31   :  { %3814 = vmatprep.subr.bf16.mxu0 %v4384_v14 }
 0xb34   :  { %3816 = vmatpush3.bf16.msra.mxu0 %v4384_v14 }
 0xb35   :  { %3818 = vmatprep.subr.bf16.mxu0 %v4369_v9 }
 0xc02   :  { %v3541_v38 = vpop.f32.mrb[8].mxu0 }
 0xc03   :  { %v3949_v39 = vadd.f32 %v3541_v38, %v4453_v29  ;;  %v883_v40 = vpop.f32.mrb[9].mxu0 }
 0xc04   :  { %v3950_v41 = vadd.f32 %v4453_v29, %v883_v40 }
 0xc05   :  { %4077 = vtanh.f32 %v3949_v39  ;;  %v3210_v44 = vmul.f32 -1.442695, %v3949_v39 }
 0xc06   :  { %4079 = vtanh.f32 %v3950_v41  ;;  %v3209_v45 = vmul.f32 -1.442695, %v3950_v41 }
 0xc07   :  { %4081 = vpow2.f32 %v3210_v44 }
 0xc08   :  { %4083 = vpow2.f32 %v3209_v45 }
 0xc0f   :  { %v4078_v42 = vpop.eup %4077 }
 0xc10   :  { %v4080_v43 = vpop.eup %4079  ;;  %914 = vrot.lane.b32.xlu1 %v4078_v42, %s4290_s0 }
 0xc11   :  { %912 = vrot.lane.b32.xlu0 %v4080_v43, %s4290_s0  ;;  %v4082_v46 = vpop.eup %4081 }
 0xc12   :  { %v4084_v47 = vpop.eup %4083  ;;  %v901_v48 = vadd.f32 1.0, %v4082_v46 }
 0xc13   :  { %v900_v49 = vadd.f32 1.0, %v4084_v47 }
 0xc14   :  { %4085 = vrcp.f32 %v901_v48 }
 0xc15   :  { %4087 = vrcp.f32 %v900_v49 }
 0xc1e   :  { %v4086_v50 = vpop.eup %4085 }
 0xc1f   :  { %v4088_v52 = vpop.eup %4087  ;;  %v909_v56 = vmul.f32 %v4086_v50, %v790_v25 }
 0xc20   :  { %v908_v58 = vmul.f32 %v4088_v52, %v789_v27 }
 0xc82   :  { %v915_v51 = vpop.permute.xlu1 %914 }
 0xc83   :  { %v919_v53 = vmul.f32 %v4086_v50, %v915_v51  ;;  %v913_v54 = vpop.permute.xlu0 %912 }
 0xc84   :  { %v918_v55 = vmul.f32 %v4088_v52, %v913_v54 }
 0xc85   :  { %924 = vrot.lane.b32.xlu1 %v919_v53, %s4291_s17 }
 0xc86   :  { %922 = vrot.lane.b32.xlu0 %v918_v55, %s4291_s17 }
 0xcf7   :  { %v925_v57 = vpop.permute.xlu1 %924 }
 0xcf8   :  { %v929_v59 = vadd.f32 %v925_v57, %v909_v56  ;;  %v923_v60 = vpop.permute.xlu0 %922 }
 0xcf9   :  { %v928_v61 = vadd.f32 %v923_v60, %v908_v58 }
 0xcfa   :  { %4089 = vtanh.f32 %v929_v59 }
 0xcfb   :  { %4091 = vtanh.f32 %v928_v61 }
 0xd04   :  { %v4090_v62 = vpop.eup %4089 }
 0xd05   :  { %v4092_v63 = vpop.eup %4091  ;;  %936 = vrot.lane.b32.xlu1 %v4090_v62, %s4290_s0 }
 0xd06   :  { %934 = vrot.lane.b32.xlu0 %v4092_v63, %s4290_s0 }
 0xd77   :  { %v937_v0 = vpop.permute.xlu1 %936 }
 0xd78   :  { %v941_v1 = vmul.f32 %v4086_v50, %v937_v0  ;;  %v935_v2 = vpop.permute.xlu0 %934 }
 0xd79   :  { %v940_v3 = vmul.f32 %v4088_v52, %v935_v2 }
 0xd7a   :  { %946 = vrot.lane.b32.xlu1 %v941_v1, %s4291_s17 }
 0xd7b   :  { %944 = vrot.lane.b32.xlu0 %v940_v3, %s4291_s17 }
 0xdec   :  { %v947_v4 = vpop.permute.xlu1 %946 }
 0xded   :  { %951 = vst.msk [vmem:[#allocation2 + $0x48] sm:$0xff] %vm64_vm0, %v947_v4  ;;  %v945_v5 = vpop.permute.xlu0 %944 }
 0xdee   :  { %950 = vst.msk [vmem:[#allocation2 + $0x40] sm:$0xff] %vm64_vm0, %v945_v5  ;;  %3550 = vmatprep.mubr.msk.f32.mxu0 %vm64_vm0, %v945_v5 }
 0xdef   :  { %3551 = vmatmul.mubr.msk.f32.vlgmr.msra.gmra.mrb[10].mxu0 %vm64_vm0, %v947_v4 }
 0xdf0   :  { %3820 = vmatpush3.bf16.msra.mxu0 %v4369_v9 }
 0xdf1   :  { %3822 = vmatprep.subr.bf16.mxu0 %v4384_v14 }
 0xdf4   :  { %3824 = vmatpush3.bf16.msra.mxu0 %v4384_v14 }
 0xdf5   :  { %3826 = vmatprep.subr.bf16.mxu0 %v4369_v9 }
 0xec2   :  { %v3552_v6 = vpop.f32.mrb[10].mxu0 }
 0xec3   :  { %v3951_v7 = vadd.f32 %v3552_v6, %v4453_v29  ;;  %v1022_v8 = vpop.f32.mrb[11].mxu0 }
 0xec4   :  { %v3952_v10 = vadd.f32 %v4453_v29, %v1022_v8 }
 0xec5   :  { %4093 = vtanh.f32 %v3951_v7  ;;  %v3214_v13 = vmul.f32 -1.442695, %v3951_v7 }
 0xec6   :  { %4095 = vtanh.f32 %v3952_v10  ;;  %v3213_v15 = vmul.f32 -1.442695, %v3952_v10 }
 0xec7   :  { %4097 = vpow2.f32 %v3214_v13 }
 0xec8   :  { %4099 = vpow2.f32 %v3213_v15 }
 0xecf   :  { %v4094_v11 = vpop.eup %4093 }
 0xed0   :  { %v4096_v12 = vpop.eup %4095  ;;  %1053 = vrot.lane.b32.xlu1 %v4094_v11, %s4290_s0 }
 0xed1   :  { %1051 = vrot.lane.b32.xlu0 %v4096_v12, %s4290_s0  ;;  %v4098_v16 = vpop.eup %4097 }
 0xed2   :  { %v4100_v17 = vpop.eup %4099  ;;  %v1040_v18 = vadd.f32 1.0, %v4098_v16 }
 0xed3   :  { %v1039_v19 = vadd.f32 1.0, %v4100_v17 }
 0xed4   :  { %4101 = vrcp.f32 %v1040_v18 }
 0xed5   :  { %4103 = vrcp.f32 %v1039_v19 }
 0xede   :  { %v4102_v20 = vpop.eup %4101 }
 0xedf   :  { %v4104_v22 = vpop.eup %4103  ;;  %v1048_v26 = vmul.f32 %v4102_v20, %v929_v59 }
 0xee0   :  { %v1047_v30 = vmul.f32 %v4104_v22, %v928_v61 }
 0xf42   :  { %v1054_v21 = vpop.permute.xlu1 %1053 }
 0xf43   :  { %v1058_v23 = vmul.f32 %v4102_v20, %v1054_v21  ;;  %v1052_v24 = vpop.permute.xlu0 %1051 }
 0xf44   :  { %v1057_v25 = vmul.f32 %v4104_v22, %v1052_v24 }
 0xf45   :  { %1063 = vrot.lane.b32.xlu1 %v1058_v23, %s4291_s17 }
 0xf46   :  { %1061 = vrot.lane.b32.xlu0 %v1057_v25, %s4291_s17 }
 0xfb7   :  { %v1064_v27 = vpop.permute.xlu1 %1063 }
 0xfb8   :  { %v1068_v31 = vadd.f32 %v1064_v27, %v1048_v26  ;;  %v1062_v32 = vpop.permute.xlu0 %1061  ;;  %v1373_v27 = vld [vmem:[%s4890_s5] sm:$0xff] }
 0xfb9   :  { %v1067_v33 = vadd.f32 %v1062_v32, %v1047_v30  ;;  %v1374_v30 = vld [vmem:[%s4890_s5 + $0x8] sm:$0xff]  ;;  %v4292_v32 = vmov 0.0|0.0  }
 0xfba   :  { %4105 = vtanh.f32 %v1068_v31  ;;  %3833 = vmatprep.subr.bf16.mxu1 %v4292_v32 }
 0xfbb   :  { %4107 = vtanh.f32 %v1067_v33 }
 0xfc4   :  { %v4106_v34 = vpop.eup %4105 }
 0xfc5   :  { %v4108_v35 = vpop.eup %4107  ;;  %1075 = vrot.lane.b32.xlu1 %v4106_v34, %s4290_s0  ;;  %v1376_v34 = vld [vmem:[%s4890_s5 + $0x18] sm:$0xff] }
 0xfc6   :  { %1073 = vrot.lane.b32.xlu0 %v4108_v35, %s4290_s0 }
0x1037   :  { %v1076_v36 = vpop.permute.xlu1 %1075 }
0x1038   :  { %v1080_v37 = vmul.f32 %v4102_v20, %v1076_v36  ;;  %v1074_v38 = vpop.permute.xlu0 %1073 }
0x1039   :  { %v1079_v39 = vmul.f32 %v4104_v22, %v1074_v38 }
0x103a   :  { %1085 = vrot.lane.b32.xlu1 %v1080_v37, %s4291_s17 }
0x103b   :  { %1083 = vrot.lane.b32.xlu0 %v1079_v39, %s4291_s17 }
0x10ac   :  { %v1086_v40 = vpop.permute.xlu1 %1085 }
0x10ad   :  { %1090 = vst.msk [vmem:[#allocation2 + $0x58] sm:$0xff] %vm64_vm0, %v1086_v40  ;;  %v1084_v41 = vpop.permute.xlu0 %1083 }
0x10ae   :  { %1089 = vst.msk [vmem:[#allocation2 + $0x50] sm:$0xff] %vm64_vm0, %v1084_v41  ;;  %3561 = vmatprep.mubr.msk.f32.mxu0 %vm64_vm0, %v1084_v41 }
0x10af   :  { %3562 = vmatmul.mubr.msk.f32.vlgmr.msra.gmra.mrb[12].mxu0 %vm64_vm0, %v1086_v40 }
0x10b0   :  { %3828 = vmatpush3.bf16.msra.mxu0 %v4369_v9 }
0x10b1   :  { %3830 = vmatprep.subr.bf16.mxu0 %v4384_v14 }
0x10b4   :  { %3832 = vmatpush3.bf16.msra.mxu0 %v4384_v14 }
0x10b5   :  { %3923 = vmatprep.subr.bf16.mxu0 %v4292_v32 }
0x1182   :  { %v3563_v42 = vpop.f32.mrb[12].mxu0 }
0x1183   :  { %v3953_v43 = vadd.f32 %v3563_v42, %v4453_v29  ;;  %v1161_v44 = vpop.f32.mrb[13].mxu0 }
0x1184   :  { %v3954_v45 = vadd.f32 %v4453_v29, %v1161_v44  ;;  %v1369_v44 = vld [vmem:[%s4889_s4] sm:$0xff] }
0x1185   :  { %4109 = vtanh.f32 %v3953_v43  ;;  %v3218_v48 = vmul.f32 -1.442695, %v3953_v43 }
0x1186   :  { %4111 = vtanh.f32 %v3954_v45  ;;  %v3217_v9 = vmul.f32 -1.442695, %v3954_v45  ;;  %v1370_v45 = vld [vmem:[%s4889_s4 + $0x8] sm:$0xff] }
0x1187   :  { %4113 = vpow2.f32 %v3218_v48  ;;  %v1372_v48 = vld [vmem:[%s4889_s4 + $0x18] sm:$0xff] }
0x1188   :  { %4115 = vpow2.f32 %v3217_v9 }
0x118f   :  { %v4110_v46 = vpop.eup %4109 }
0x1190   :  { %v4112_v47 = vpop.eup %4111  ;;  %1192 = vrot.lane.b32.xlu1 %v4110_v46, %s4290_s0  ;;  %v4622_v46 = vpack.c.bf16 %v1370_v45, %v1369_v44 }
0x1191   :  { %1190 = vrot.lane.b32.xlu0 %v4112_v47, %s4290_s0  ;;  %v4114_v49 = vpop.eup %4113  ;;  %v1371_v47 = vld [vmem:[%s4889_s4 + $0x10] sm:$0xff] }
0x1192   :  { %v4116_v14 = vpop.eup %4115  ;;  %v1179_v50 = vadd.f32 1.0, %v4114_v49  ;;  %v4632_v49 = vpack.c.bf16 %v1372_v48, %v1371_v47 }
0x1193   :  { %v1178_v51 = vadd.f32 1.0, %v4116_v14 }
0x1194   :  { %4117 = vrcp.f32 %v1179_v50 }
0x1195   :  { %4119 = vrcp.f32 %v1178_v51 }
0x119e   :  { %v4118_v52 = vpop.eup %4117 }
0x119f   :  { %v4120_v54 = vpop.eup %4119  ;;  %v1187_v58 = vmul.f32 %v4118_v52, %v1068_v31  ;;  %v1375_v31 = vld [vmem:[%s4890_s5 + $0x10] sm:$0xff]  ;;  %s4294_s5 = smov 96  }
0x11a0   :  { %v1186_v60 = vmul.f32 %v4120_v54, %v1067_v33  ;;  %v3834_v33 = vpack.c.bf16 %v1374_v30, %v1373_v27  ;;  %v3837_v35 = vpack.c.bf16 %v1376_v34, %v1375_v31  ;;  %v1630_v27 = vld [vmem:[#allocation2 + $0x40] sm:$0xff]  ;;  %v1631_v30 = vld [vmem:[#allocation2 + $0x48] sm:$0xff]  ;;  %v1632_v31 = vld [vmem:[#allocation2 + $0x50] sm:$0xff] }
0x11a2   :  { %3835 = vmatpush3.bf16.msra.mxu1 %v3834_v33 }
0x11a3   :  { %3836 = vmatprep.subr.bf16.mxu1 %v4292_v32 }
0x11a6   :  { %3838 = vmatpush3.bf16.msra.mxu1 %v3837_v35 }
0x11a7   :  { %3839 = vmatprep.subr.bf16.mxu1 %v4292_v32 }
0x1202   :  { %v1193_v53 = vpop.permute.xlu1 %1192 }
0x1203   :  { %v1197_v55 = vmul.f32 %v4118_v52, %v1193_v53  ;;  %v1191_v56 = vpop.permute.xlu0 %1190 }
0x1204   :  { %v1196_v57 = vmul.f32 %v4120_v54, %v1191_v56 }
0x1205   :  { %1202 = vrot.lane.b32.xlu1 %v1197_v55, %s4291_s17  ;;  %v1537_v55 = vld [vmem:[%s4892_s7 + $0x8] sm:$0xff] }
0x1206   :  { %1200 = vrot.lane.b32.xlu0 %v1196_v57, %s4291_s17  ;;  %v1538_v57 = vld [vmem:[%s4892_s7 + $0x10] sm:$0xff] }
0x1277   :  { %v1203_v59 = vpop.permute.xlu1 %1202 }
0x1278   :  { %v4568_v61 = vadd.f32 %v1203_v59, %v1187_v58  ;;  %v1201_v62 = vpop.permute.xlu0 %1200  ;;  %v1539_v58 = vld [vmem:[%s4892_s7 + $0x18] sm:$0xff] }
0x1279   :  { %v4570_v63 = vadd.f32 %v1201_v62, %v1186_v60  ;;  %v4660_v59 = vpack.c.bf16 %v1539_v58, %v1538_v57  ;;  %v3228_v60 = vld [vmem:[%s4886_s1 + $0x20] sm:$0xff] }
0x127a   :  { %4121 = vtanh.f32 %v4568_v61 }
0x127b   :  { %4123 = vtanh.f32 %v4570_v63 }
0x1284   :  { %v4122_v0 = vpop.eup %4121 }
0x1285   :  { %v4124_v1 = vpop.eup %4123  ;;  %1214 = vrot.lane.b32.xlu1 %v4122_v0, %s4290_s0 }
0x1286   :  { %1212 = vrot.lane.b32.xlu0 %v4124_v1, %s4290_s0 }
0x12f7   :  { %v1215_v2 = vpop.permute.xlu1 %1214 }
0x12f8   :  { %v1219_v3 = vmul.f32 %v4118_v52, %v1215_v2  ;;  %v1213_v4 = vpop.permute.xlu0 %1212 }
0x12f9   :  { %v1218_v5 = vmul.f32 %v4120_v54, %v1213_v4  ;;  %v1536_v54 = vld [vmem:[%s4892_s7] sm:$0xff] }
0x12fa   :  { %1224 = vrot.lane.b32.xlu1 %v1219_v3, %s4291_s17  ;;  %v4650_v56 = vpack.c.bf16 %v1537_v55, %v1536_v54  ;;  %v4674_v4 = vld [vmem:[%s4891_s6] ss:$0 sm:$0xff] }
0x12fb   :  { %1222 = vrot.lane.b32.xlu0 %v1218_v5, %s4291_s17 }
0x136c   :  { %v1225_v6 = vpop.permute.xlu1 %1224 }
0x136d   :  { %1229 = vst.msk [vmem:[#allocation2 + $0x68] sm:$0xff] %vm64_vm0, %v1225_v6  ;;  %v1223_v7 = vpop.permute.xlu0 %1222 }
0x136e   :  { %1228 = vst.msk [vmem:[#allocation2 + $0x60] sm:$0xff] %vm64_vm0, %v1223_v7  ;;  %3572 = vmatprep.mubr.msk.f32.mxu0 %vm64_vm0, %v1223_v7  ;;  %v3230_v7 = vld [vmem:[%s4886_s1 + $0x30] sm:$0xff] }
0x136f   :  { %3573 = vmatmul.mubr.msk.f32.vlgmr.msra.gmra.mrb[14].mxu0 %vm64_vm0, %v1225_v6 }
0x1370   :  { %3736 = vmatprep.mubr.msk.f32.mxu0 %vm4293_vm1, %v4289_v28  ;;  %3925 = vmatpush3.bf16.msra.mxu0 %v3834_v33  ;;  %v1633_v33 = vld [vmem:[#allocation2 + $0x58] sm:$0xff] }
0x1371   :  { %3926 = vmatprep.subr.bf16.mxu0 %v4292_v32 }
0x1374   :  { %3928 = vmatpush3.bf16.msra.mxu0 %v3837_v35  ;;  %v1635_v35 = vld [vmem:[#allocation2 + $0x68] sm:$0xff] }
0x1375   :  { %3929 = vmatprep.subr.bf16.mxu0 %v4292_v32  ;;  %v1634_v34 = vld [vmem:[#allocation2 + $0x60] sm:$0xff] }
0x1442   :  { %v3574_v8 = vpop.f32.mrb[14].mxu0 }
0x1443   :  { %v3955_v10 = vadd.f32 %v3574_v8, %v4453_v29  ;;  %v1300_v11 = vpop.f32.mrb[15].mxu0  ;;  %v3231_v8 = vld [vmem:[%s4886_s1 + $0x38] sm:$0xff] }
0x1444   :  { %v3956_v12 = vadd.f32 %v4453_v29, %v1300_v11 }
0x1445   :  { %4125 = vtanh.f32 %v3955_v10  ;;  %v3222_v16 = vmul.f32 -1.442695, %v3955_v10 }
0x1446   :  { %4127 = vtanh.f32 %v3956_v12  ;;  %v3221_v17 = vmul.f32 -1.442695, %v3956_v12  ;;  %v3855_v12 = vpack.c.bf16 %v3231_v8, %v3230_v7 }
0x1447   :  { %4129 = vpow2.f32 %v3222_v16  ;;  %v1622_v16 = vld [vmem:[#allocation2] sm:$0xff] }
0x1448   :  { %4131 = vpow2.f32 %v3221_v17 }
0x144f   :  { %v4126_v13 = vpop.eup %4125 }
0x1450   :  { %v4128_v15 = vpop.eup %4127  ;;  %1331 = vrot.lane.b32.xlu0 %v4126_v13, %s4290_s0  ;;  %v3232_v13 = vld [vmem:[%s4887_s2 + $0x20] sm:$0xff] }
0x1451   :  { %1329 = vrot.lane.b32.xlu1 %v4128_v15, %s4290_s0  ;;  %v4130_v18 = vpop.eup %4129  ;;  %v3233_v15 = vld [vmem:[%s4887_s2 + $0x28] sm:$0xff] }
0x1452   :  { %v4132_v19 = vpop.eup %4131  ;;  %v1318_v20 = vadd.f32 1.0, %v4130_v18  ;;  %v4691_v17 = vpack.c.bf16 %v3233_v15, %v3232_v13  ;;  %v3234_v18 = vld [vmem:[%s4887_s2 + $0x30] sm:$0xff] }
0x1453   :  { %v1317_v21 = vadd.f32 1.0, %v4132_v19  ;;  %v3235_v19 = vld [vmem:[%s4887_s2 + $0x38] sm:$0xff] }
0x1454   :  { %4133 = vrcp.f32 %v1318_v20  ;;  %v4700_v20 = vpack.c.bf16 %v3235_v19, %v3234_v18 }
0x1455   :  { %4135 = vrcp.f32 %v1317_v21  ;;  %v1623_v21 = vld [vmem:[#allocation2 + $0x8] sm:$0xff] }
0x145e   :  { %v4134_v22 = vpop.eup %4133 }
0x145f   :  { %v4136_v23 = vpop.eup %4135  ;;  %v1326_v36 = vmul.f32 %v4134_v22, %v4568_v61  ;;  %v3229_v61 = vld [vmem:[%s4886_s1 + $0x28] sm:$0xff] }
0x1460   :  { %v1325_v38 = vmul.f32 %v4136_v23, %v4570_v63  ;;  %v3851_v62 = vpack.c.bf16 %v3229_v61, %v3228_v60 }
0x14c2   :  { %v1332_v29 = vpop.permute.xlu0 %1331 }
0x14c3   :  { %v1336_v24 = vmul.f32 %v4134_v22, %v1332_v29  ;;  %v1330_v25 = vpop.permute.xlu1 %1329  ;;  %v1625_v29 = vld [vmem:[#allocation2 + $0x18] sm:$0xff] }
0x14c4   :  { %v1335_v26 = vmul.f32 %v4136_v23, %v1330_v25  ;;  %v1628_v25 = vld [vmem:[#allocation2 + $0x30] sm:$0xff] }
0x14c5   :  { %1341 = vrot.lane.b32.xlu0 %v1336_v24, %s4291_s17  ;;  %v1627_v24 = vld [vmem:[#allocation2 + $0x28] sm:$0xff] }
0x14c6   :  { %1339 = vrot.lane.b32.xlu1 %v1335_v26, %s4291_s17  ;;  %v1629_v26 = vld [vmem:[#allocation2 + $0x38] sm:$0xff] }
0x1537   :  { %v1342_v37 = vpop.permute.xlu0 %1341 }
0x1538   :  { %v1346_v39 = vadd.f32 %v1342_v37, %v1326_v36  ;;  %v1340_v40 = vpop.permute.xlu1 %1339 }
0x1539   :  { %v1345_v41 = vadd.f32 %v1340_v40, %v1325_v38  ;;  %v4730_v38 = vld [vmem:[%s4893_s8] ss:$0 sm:$0xff] }
0x153a   :  { %4137 = vtanh.f32 %v1346_v39  ;;  %1378 = vrot.lane.b32.xlu0 %v1346_v39, %s4294_s5 }
0x153b   :  { %4139 = vtanh.f32 %v1345_v41  ;;  %1453 = vrot.lane.b32.xlu1 %v1345_v41, %s4294_s5 }
0x1544   :  { %v4138_v42 = vpop.eup %4137 }
0x1545   :  { %v4140_v43 = vpop.eup %4139  ;;  %1353 = vrot.lane.b32.xlu1 %v4138_v42, %s4290_s0  ;;  %v4737_v42 = vld [vmem:[%s4888_s3 + $0x1] ss:$0 sm:$0xff]  ;;  %s4295_s3 = smov [#allocation3]  }
0x1546   :  { %1351 = vrot.lane.b32.xlu0 %v4140_v43, %s4290_s0  ;;  %s3165_s8 = sshll.u32 %s4295_s3, 4  ;;  %s3166_s8 = int_to_ptr.vmem [resolvable:$true] %s3165_s8 }
0x1547   :  { %p4270_p1 = scmp.lt.s32.totalorder %s3166_s8, %s3166_s8 }
0x15ac   :  { %v1379_v9 = vpop.permute.xlu0 %1378 }
0x15ad   :  { %3584 = vmatmul.mubr.msk.f32.vlgmr.msra.gmra.mrb[0].mxu1 %vm64_vm0, %v1379_v9  ;;  %v1454_v14 = vpop.permute.xlu1 %1453 }
0x15ae   :  { %3841 = vmatpush3.bf16.msra.mxu1 %v4622_v46  ;;  %3594 = vmatprep.mubr.msk.f32.mxu1 %vm4293_vm1, %v4289_v28 }
0x15af   :  { %3842 = vmatprep.subr.bf16.mxu1 %v4292_v32 }
0x15b2   :  { %3844 = vmatpush3.bf16.msra.mxu1 %v4632_v49 }
0x15b3   :  { %3845 = vmatprep.subr.bf16.mxu1 %v4292_v32 }
0x15b5   :  { %3595 = vmatmul.mubr.msk.f32.vlgmr.msra.gmra.mrb[2].mxu1 %vm64_vm0, %v1454_v14 }
0x15b6   :  { %3605 = vmatprep.mubr.msk.f32.mxu1 %vm4293_vm1, %v4289_v28  ;;  %3847 = vmatpush3.bf16.msra.mxu1 %v4650_v56 }
0x15b7   :  { %v1354_v50 = vpop.permute.xlu1 %1353  ;;  %3848 = vmatprep.subr.bf16.mxu1 %v4292_v32 }
0x15b8   :  { %v1358_v51 = vmul.f32 %v4134_v22, %v1354_v50  ;;  %v1352_v52 = vpop.permute.xlu0 %1351  ;;  %v1624_v22 = vld [vmem:[#allocation2 + $0x10] sm:$0xff] }
0x15b9   :  { %v1357_v53 = vmul.f32 %v4136_v23, %v1352_v52  ;;  %v1626_v23 = vld [vmem:[#allocation2 + $0x20] sm:$0xff] }
0x15ba   :  { %1363 = vrot.lane.b32.xlu1 %v1358_v51, %s4291_s17  ;;  %3850 = vmatpush3.bf16.msra.mxu1 %v4660_v59 }
0x15bb   :  { %1361 = vrot.lane.b32.xlu0 %v1357_v53, %s4291_s17  ;;  %3852 = vmatprep.subr.bf16.mxu1 %v3851_v62 }
0x162c   :  { %v1364_v63 = vpop.permute.xlu1 %1363 }
0x162d   :  { %1368 = vst.msk [vmem:[#allocation2 + $0x78] sm:$0xff] %vm64_vm0, %v1364_v63  ;;  %v1362_v0 = vpop.permute.xlu0 %1361 }
0x162e   :  { %1367 = vst.msk [vmem:[#allocation2 + $0x70] sm:$0xff] %vm64_vm0, %v1362_v0 }
0x1634   :  { %v1637_v37 = vld [vmem:[#allocation2 + $0x78] sm:$0xff] }
0x1635   :  { %v1636_v36 = vld [vmem:[#allocation2 + $0x70] sm:$0xff] }
0x1680   :  { %v1448_v1 = vpop.f32.mrb[0].mxu1 }
0x1681   :  { %v3585_v2 = vpop.f32.mrb[1].mxu1 }
0x1688   :  { %v1523_v3 = vpop.f32.mrb[2].mxu1 }
0x1689   :  { %v1524_v5 = vadd.f32 %v1523_v3, %v1448_v1  ;;  %v3596_v6 = vpop.f32.mrb[3].mxu1 }
0x168b   :  { %v1534_v10 = vadd.f32 %v4674_v4, %v1524_v5 }
0x168d   :  { %v1535_v11 = vmax.f32 %v1534_v10, 0.0 }
0x168f   :  { %3606 = vmatmul.mubr.msk.f32.vlgmr.msra.gmra.mrb[4].mxu1 %vm64_vm0, %v1535_v11 }
0x1690   :  { %3854 = vmatpush3.bf16.msra.mxu1 %v3851_v62  ;;  %3616 = vmatprep.mubr.msk.f32.mxu1 %vm64_vm0, %v1622_v16 }
0x1691   :  { %3856 = vmatprep.subr.bf16.mxu1 %v3855_v12 }
0x1694   :  { %3858 = vmatpush3.bf16.msra.mxu1 %v3855_v12 }
0x1695   :  { %3860 = vmatprep.subr.bf16.mxu1 %v4691_v17 }
0x1697   :  { %3617 = vmatmul.mubr.msk.f32.vlgmr.msra.gmra.mrb[6].mxu1 %vm64_vm0, %v1623_v21 }
0x1698   :  { %3619 = vmatprep.mubr.msk.f32.mxu1 %vm64_vm0, %v1624_v22  ;;  %3862 = vmatpush3.bf16.msra.mxu1 %v4691_v17 }
0x1699   :  { %3864 = vmatprep.subr.bf16.mxu1 %v4700_v20 }
0x169b   :  { %3620 = vmatmul.mubr.msk.f32.gmra.mrb[8].mxu1 %vm64_vm0, %v1625_v29 }
0x169c   :  { %3622 = vmatprep.mubr.msk.f32.mxu1 %vm64_vm0, %v1626_v23  ;;  %3866 = vmatpush3.bf16.msra.mxu1 %v4700_v20 }
0x169d   :  { %3868 = vmatprep.subr.bf16.mxu1 %v4691_v17 }
0x169f   :  { %3623 = vmatmul.mubr.msk.f32.gmra.mrb[10].mxu1 %vm64_vm0, %v1627_v24 }
0x16a0   :  { %3625 = vmatprep.mubr.msk.f32.mxu1 %vm64_vm0, %v1628_v25 }
0x16a3   :  { %3626 = vmatmul.mubr.msk.f32.gmra.mrb[12].mxu1 %vm64_vm0, %v1629_v26 }
0x16a4   :  { %3628 = vmatprep.mubr.msk.f32.mxu1 %vm64_vm0, %v1630_v27 }
0x16a7   :  { %3629 = vmatmul.mubr.msk.f32.gmra.mrb[14].mxu1 %vm64_vm0, %v1631_v30 }
0x16a8   :  { %3631 = vmatprep.mubr.msk.f32.mxu1 %vm64_vm0, %v1632_v31 }
0x16ab   :  { %3632 = vmatmul.mubr.msk.f32.gmra.mrb[16].mxu1 %vm64_vm0, %v1633_v33 }
0x16ac   :  { %3634 = vmatprep.mubr.msk.f32.mxu1 %vm64_vm0, %v1634_v34 }
0x16af   :  { %3635 = vmatmul.mubr.msk.f32.gmra.mrb[18].mxu1 %vm64_vm0, %v1635_v35 }
0x16b0   :  { %3637 = vmatprep.mubr.msk.f32.mxu1 %vm64_vm0, %v1636_v36 }
0x16b3   :  { %3638 = vmatmul.mubr.msk.f32.gmra.mrb[20].mxu1 %vm64_vm0, %v1637_v37 }
0x16b4   :  { %3648 = vmatprep.mubr.f32.mxu1 %v4289_v28 }
0x16b7   :  { %3649 = vmatmul.mubr.f32.vlgmr.msra.gmra.mrb[6].mxu1 %v4289_v28 }
0x16b8   :  { %3870 = vmatpush3.bf16.msra.mxu1 %v4691_v17 }
0x16b9   :  { %3872 = vmatprep.subr.bf16.mxu1 %v4700_v20 }
0x16bc   :  { %3874 = vmatpush3.bf16.msra.mxu1 %v4700_v20 }
0x16bd   :  { %3876 = vmatprep.subr.bf16.mxu1 %v4691_v17 }
0x1762   :  { %v1616_v39 = vpop.f32.mrb[4].mxu1 }
0x1763   :  { %v1617_v40 = vadd.f32 %v4730_v38, %v1616_v39  ;;  %v3607_v41 = vpop.f32.mrb[5].mxu1 }
0x1765   :  { %1621 = vst.msk [vmem:[#allocation3] sm:$0x3] %vm1620_vm2, %v1617_v40 }
0x178a   :  { %v3650_v43 = vpop.f32.mrb[6].mxu1 }
0x178b   :  { %v3957_v44 = vadd.f32 %v3650_v43, %v4737_v42  ;;  %v1915_v45 = vpop.f32.mrb[7].mxu1 }
0x178c   :  { %v3958_v47 = vadd.f32 %v4737_v42, %v1915_v45 }
0x178d   :  { %4141 = vtanh.f32 %v3957_v44  ;;  %v3255_v14 = vmul.f32 -1.442695, %v3957_v44 }
0x178e   :  { %4143 = vtanh.f32 %v3958_v47  ;;  %v3254_v50 = vmul.f32 -1.442695, %v3958_v47 }
0x178f   :  { %4145 = vpow2.f32 %v3255_v14 }
0x1790   :  { %4147 = vpow2.f32 %v3254_v50 }
0x1797   :  { %v4142_v48 = vpop.eup %4141 }
0x1798   :  { %v4144_v9 = vpop.eup %4143  ;;  %1946 = vrot.lane.b32.xlu1 %v4142_v48, %s4290_s0 }
0x1799   :  { %1944 = vrot.lane.b32.xlu0 %v4144_v9, %s4290_s0  ;;  %v4146_v51 = vpop.eup %4145 }
0x179a   :  { %v4148_v52 = vpop.eup %4147  ;;  %v1933_v53 = vadd.f32 1.0, %v4146_v51 }
0x179b   :  { %v1932_v54 = vadd.f32 1.0, %v4148_v52 }
0x179c   :  { %4149 = vrcp.f32 %v1933_v53 }
0x179d   :  { %4151 = vrcp.f32 %v1932_v54 }
0x17a6   :  { %v4150_v55 = vpop.eup %4149 }
0x17a7   :  { %v4152_v58 = vpop.eup %4151  ;;  %v1941_v63 = vmul.f32 0.0, %v4150_v55 }
0x17a8   :  { %v1940_v1 = vmul.f32 0.0, %v4152_v58 }
0x180a   :  { %v1947_v57 = vpop.permute.xlu1 %1946 }
0x180b   :  { %v1951_v60 = vmul.f32 %v4150_v55, %v1947_v57  ;;  %v1945_v61 = vpop.permute.xlu0 %1944 }
0x180c   :  { %v1950_v62 = vmul.f32 %v4152_v58, %v1945_v61 }
0x180d   :  { %1956 = vrot.lane.b32.xlu1 %v1951_v60, %s4291_s17 }
0x180e   :  { %1954 = vrot.lane.b32.xlu0 %v1950_v62, %s4291_s17 }
0x187f   :  { %v1957_v0 = vpop.permute.xlu1 %1956 }
0x1880   :  { %v1961_v2 = vadd.f32 %v1957_v0, %v1941_v63  ;;  %v1955_v3 = vpop.permute.xlu0 %1954 }
0x1881   :  { %v1960_v5 = vadd.f32 %v1955_v3, %v1940_v1 }
0x1882   :  { %4153 = vtanh.f32 %v1961_v2 }
0x1883   :  { %4155 = vtanh.f32 %v1960_v5 }
0x188c   :  { %v4154_v6 = vpop.eup %4153 }
0x188d   :  { %v4156_v7 = vpop.eup %4155  ;;  %1968 = vrot.lane.b32.xlu1 %v4154_v6, %s4290_s0 }
0x188e   :  { %1966 = vrot.lane.b32.xlu0 %v4156_v7, %s4290_s0 }
0x18ff   :  { %v1969_v8 = vpop.permute.xlu1 %1968 }
0x1900   :  { %v1973_v10 = vmul.f32 %v4150_v55, %v1969_v8  ;;  %v1967_v11 = vpop.permute.xlu0 %1966 }
0x1901   :  { %v1972_v12 = vmul.f32 %v4152_v58, %v1967_v11 }
0x1902   :  { %1978 = vrot.lane.b32.xlu1 %v1973_v10, %s4291_s17 }
0x1903   :  { %1976 = vrot.lane.b32.xlu0 %v1972_v12, %s4291_s17 }
0x1974   :  { %v1979_v15 = vpop.permute.xlu1 %1978 }
0x1975   :  { %v1977_v13 = vpop.permute.xlu0 %1976 }
0x1976   :  { %3659 = vmatprep.mubr.msk.f32.mxu1 %vm64_vm0, %v1977_v13 }
0x1977   :  { %3660 = vmatmul.mubr.msk.f32.vlgmr.msra.gmra.mrb[8].mxu1 %vm64_vm0, %v1979_v15 }
0x1978   :  { %3878 = vmatpush3.bf16.msra.mxu1 %v4691_v17 }
0x1979   :  { %3880 = vmatprep.subr.bf16.mxu1 %v4700_v20 }
0x197c   :  { %3882 = vmatpush3.bf16.msra.mxu1 %v4700_v20 }
0x197d   :  { %3884 = vmatprep.subr.bf16.mxu1 %v4691_v17 }
0x1a4a   :  { %v3661_v16 = vpop.f32.mrb[8].mxu1 }
0x1a4b   :  { %v3959_v18 = vadd.f32 %v3661_v16, %v4737_v42  ;;  %v2050_v19 = vpop.f32.mrb[9].mxu1 }
0x1a4c   :  { %v3960_v21 = vadd.f32 %v4737_v42, %v2050_v19 }
0x1a4d   :  { %4157 = vtanh.f32 %v3959_v18  ;;  %v3259_v23 = vmul.f32 -1.442695, %v3959_v18 }
0x1a4e   :  { %4159 = vtanh.f32 %v3960_v21  ;;  %v3258_v24 = vmul.f32 -1.442695, %v3960_v21 }
0x1a4f   :  { %4161 = vpow2.f32 %v3259_v23 }
0x1a50   :  { %4163 = vpow2.f32 %v3258_v24 }
0x1a57   :  { %v4158_v22 = vpop.eup %4157 }
0x1a58   :  { %v4160_v29 = vpop.eup %4159  ;;  %2081 = vrot.lane.b32.xlu1 %v4158_v22, %s4290_s0 }
0x1a59   :  { %2079 = vrot.lane.b32.xlu0 %v4160_v29, %s4290_s0  ;;  %v4162_v25 = vpop.eup %4161 }
0x1a5a   :  { %v4164_v26 = vpop.eup %4163  ;;  %v2068_v27 = vadd.f32 1.0, %v4162_v25 }
0x1a5b   :  { %v2067_v30 = vadd.f32 1.0, %v4164_v26 }
0x1a5c   :  { %4165 = vrcp.f32 %v2068_v27 }
0x1a5d   :  { %4167 = vrcp.f32 %v2067_v30 }
0x1a66   :  { %v4166_v31 = vpop.eup %4165 }
0x1a67   :  { %v4168_v34 = vpop.eup %4167  ;;  %v2076_v39 = vmul.f32 %v4166_v31, %v1961_v2 }
0x1a68   :  { %v2075_v41 = vmul.f32 %v4168_v34, %v1960_v5 }
0x1aca   :  { %v2082_v33 = vpop.permute.xlu1 %2081 }
0x1acb   :  { %v2086_v35 = vmul.f32 %v4166_v31, %v2082_v33  ;;  %v2080_v36 = vpop.permute.xlu0 %2079 }
0x1acc   :  { %v2085_v37 = vmul.f32 %v4168_v34, %v2080_v36 }
0x1acd   :  { %2091 = vrot.lane.b32.xlu1 %v2086_v35, %s4291_s17 }
0x1ace   :  { %2089 = vrot.lane.b32.xlu0 %v2085_v37, %s4291_s17 }
0x1b3f   :  { %v2092_v40 = vpop.permute.xlu1 %2091 }
0x1b40   :  { %v2096_v43 = vadd.f32 %v2092_v40, %v2076_v39  ;;  %v2090_v44 = vpop.permute.xlu0 %2089 }
0x1b41   :  { %v2095_v45 = vadd.f32 %v2090_v44, %v2075_v41 }
0x1b42   :  { %4169 = vtanh.f32 %v2096_v43 }
0x1b43   :  { %4171 = vtanh.f32 %v2095_v45 }
0x1b4c   :  { %v4170_v47 = vpop.eup %4169 }
0x1b4d   :  { %v4172_v48 = vpop.eup %4171  ;;  %2103 = vrot.lane.b32.xlu1 %v4170_v47, %s4290_s0 }
0x1b4e   :  { %2101 = vrot.lane.b32.xlu0 %v4172_v48, %s4290_s0 }
0x1bbf   :  { %v2104_v9 = vpop.permute.xlu1 %2103 }
0x1bc0   :  { %v2108_v14 = vmul.f32 %v4166_v31, %v2104_v9  ;;  %v2102_v50 = vpop.permute.xlu0 %2101 }
0x1bc1   :  { %v2107_v51 = vmul.f32 %v4168_v34, %v2102_v50 }
0x1bc2   :  { %2113 = vrot.lane.b32.xlu1 %v2108_v14, %s4291_s17 }
0x1bc3   :  { %2111 = vrot.lane.b32.xlu0 %v2107_v51, %s4291_s17 }
0x1c34   :  { %v2114_v53 = vpop.permute.xlu1 %2113 }
0x1c35   :  { %v2112_v52 = vpop.permute.xlu0 %2111 }
0x1c36   :  { %3670 = vmatprep.mubr.msk.f32.mxu1 %vm64_vm0, %v2112_v52 }
0x1c37   :  { %3671 = vmatmul.mubr.msk.f32.vlgmr.msra.gmra.mrb[10].mxu1 %vm64_vm0, %v2114_v53 }
0x1c38   :  { %3886 = vmatpush3.bf16.msra.mxu1 %v4691_v17 }
0x1c39   :  { %3888 = vmatprep.subr.bf16.mxu1 %v4700_v20 }
0x1c3c   :  { %3890 = vmatpush3.bf16.msra.mxu1 %v4700_v20 }
0x1c3d   :  { %3892 = vmatprep.subr.bf16.mxu1 %v4691_v17 }
0x1d0a   :  { %v3672_v54 = vpop.f32.mrb[10].mxu1 }
0x1d0b   :  { %v3961_v55 = vadd.f32 %v3672_v54, %v4737_v42  ;;  %v2185_v57 = vpop.f32.mrb[11].mxu1 }
0x1d0c   :  { %v3962_v58 = vadd.f32 %v4737_v42, %v2185_v57 }
0x1d0d   :  { %4173 = vtanh.f32 %v3961_v55  ;;  %v3263_v62 = vmul.f32 -1.442695, %v3961_v55 }
0x1d0e   :  { %4175 = vtanh.f32 %v3962_v58  ;;  %v3262_v63 = vmul.f32 -1.442695, %v3962_v58 }
0x1d0f   :  { %4177 = vpow2.f32 %v3263_v62 }
0x1d10   :  { %4179 = vpow2.f32 %v3262_v63 }
0x1d17   :  { %v4174_v60 = vpop.eup %4173 }
0x1d18   :  { %v4176_v61 = vpop.eup %4175  ;;  %2216 = vrot.lane.b32.xlu1 %v4174_v60, %s4290_s0 }
0x1d19   :  { %2214 = vrot.lane.b32.xlu0 %v4176_v61, %s4290_s0  ;;  %v4178_v0 = vpop.eup %4177 }
0x1d1a   :  { %v4180_v1 = vpop.eup %4179  ;;  %v2203_v2 = vadd.f32 1.0, %v4178_v0 }
0x1d1b   :  { %v2202_v3 = vadd.f32 1.0, %v4180_v1 }
0x1d1c   :  { %4181 = vrcp.f32 %v2203_v2 }
0x1d1d   :  { %4183 = vrcp.f32 %v2202_v3 }
0x1d26   :  { %v4182_v5 = vpop.eup %4181 }
0x1d27   :  { %v4184_v7 = vpop.eup %4183  ;;  %v2211_v12 = vmul.f32 %v4182_v5, %v2096_v43 }
0x1d28   :  { %v2210_v15 = vmul.f32 %v4184_v7, %v2095_v45 }
0x1d8a   :  { %v2217_v6 = vpop.permute.xlu1 %2216 }
0x1d8b   :  { %v2221_v8 = vmul.f32 %v4182_v5, %v2217_v6  ;;  %v2215_v10 = vpop.permute.xlu0 %2214 }
0x1d8c   :  { %v2220_v11 = vmul.f32 %v4184_v7, %v2215_v10 }
0x1d8d   :  { %2226 = vrot.lane.b32.xlu1 %v2221_v8, %s4291_s17 }
0x1d8e   :  { %2224 = vrot.lane.b32.xlu0 %v2220_v11, %s4291_s17 }
0x1dff   :  { %v2227_v13 = vpop.permute.xlu1 %2226 }
0x1e00   :  { %v2231_v16 = vadd.f32 %v2227_v13, %v2211_v12  ;;  %v2225_v18 = vpop.permute.xlu0 %2224 }
0x1e01   :  { %v2230_v19 = vadd.f32 %v2225_v18, %v2210_v15 }
0x1e02   :  { %4185 = vtanh.f32 %v2231_v16 }
0x1e03   :  { %4187 = vtanh.f32 %v2230_v19 }
0x1e0c   :  { %v4186_v21 = vpop.eup %4185 }
0x1e0d   :  { %v4188_v22 = vpop.eup %4187  ;;  %2238 = vrot.lane.b32.xlu1 %v4186_v21, %s4290_s0 }
0x1e0e   :  { %2236 = vrot.lane.b32.xlu0 %v4188_v22, %s4290_s0 }
0x1e7f   :  { %v2239_v29 = vpop.permute.xlu1 %2238 }
0x1e80   :  { %v2243_v23 = vmul.f32 %v4182_v5, %v2239_v29  ;;  %v2237_v24 = vpop.permute.xlu0 %2236 }
0x1e81   :  { %v2242_v25 = vmul.f32 %v4184_v7, %v2237_v24 }
0x1e82   :  { %2248 = vrot.lane.b32.xlu1 %v2243_v23, %s4291_s17 }
0x1e83   :  { %2246 = vrot.lane.b32.xlu0 %v2242_v25, %s4291_s17 }
0x1ef4   :  { %v2249_v27 = vpop.permute.xlu1 %2248 }
0x1ef5   :  { %v2247_v26 = vpop.permute.xlu0 %2246 }
0x1ef6   :  { %3681 = vmatprep.mubr.msk.f32.mxu1 %vm64_vm0, %v2247_v26 }
0x1ef7   :  { %3682 = vmatmul.mubr.msk.f32.vlgmr.msra.gmra.mrb[12].mxu1 %vm64_vm0, %v2249_v27 }
0x1ef8   :  { %3894 = vmatpush3.bf16.msra.mxu1 %v4691_v17 }
0x1ef9   :  { %3896 = vmatprep.subr.bf16.mxu1 %v4700_v20 }
0x1efc   :  { %3898 = vmatpush3.bf16.msra.mxu1 %v4700_v20 }
0x1efd   :  { %3900 = vmatprep.subr.bf16.mxu1 %v4691_v17 }
0x1fca   :  { %v3683_v30 = vpop.f32.mrb[12].mxu1 }
0x1fcb   :  { %v3963_v31 = vadd.f32 %v3683_v30, %v4737_v42  ;;  %v2320_v33 = vpop.f32.mrb[13].mxu1 }
0x1fcc   :  { %v3964_v34 = vadd.f32 %v4737_v42, %v2320_v33 }
0x1fcd   :  { %4189 = vtanh.f32 %v3963_v31  ;;  %v3267_v37 = vmul.f32 -1.442695, %v3963_v31 }
0x1fce   :  { %4191 = vtanh.f32 %v3964_v34  ;;  %v3266_v39 = vmul.f32 -1.442695, %v3964_v34 }
0x1fcf   :  { %4193 = vpow2.f32 %v3267_v37 }
0x1fd0   :  { %4195 = vpow2.f32 %v3266_v39 }
0x1fd7   :  { %v4190_v35 = vpop.eup %4189 }
0x1fd8   :  { %v4192_v36 = vpop.eup %4191  ;;  %2351 = vrot.lane.b32.xlu1 %v4190_v35, %s4290_s0 }
0x1fd9   :  { %2349 = vrot.lane.b32.xlu0 %v4192_v36, %s4290_s0  ;;  %v4194_v40 = vpop.eup %4193 }
0x1fda   :  { %v4196_v41 = vpop.eup %4195  ;;  %v2338_v43 = vadd.f32 1.0, %v4194_v40 }
0x1fdb   :  { %v2337_v44 = vadd.f32 1.0, %v4196_v41 }
0x1fdc   :  { %4197 = vrcp.f32 %v2338_v43 }
0x1fdd   :  { %4199 = vrcp.f32 %v2337_v44 }
0x1fe6   :  { %v4198_v45 = vpop.eup %4197 }
0x1fe7   :  { %v4200_v48 = vpop.eup %4199  ;;  %v2346_v51 = vmul.f32 %v4198_v45, %v2231_v16 }
0x1fe8   :  { %v2345_v53 = vmul.f32 %v4200_v48, %v2230_v19 }
0x204a   :  { %v2352_v47 = vpop.permute.xlu1 %2351 }
0x204b   :  { %v2356_v9 = vmul.f32 %v4198_v45, %v2352_v47  ;;  %v2350_v14 = vpop.permute.xlu0 %2349 }
0x204c   :  { %v2355_v50 = vmul.f32 %v4200_v48, %v2350_v14 }
0x204d   :  { %2361 = vrot.lane.b32.xlu1 %v2356_v9, %s4291_s17 }
0x204e   :  { %2359 = vrot.lane.b32.xlu0 %v2355_v50, %s4291_s17 }
0x20bf   :  { %v2362_v52 = vpop.permute.xlu1 %2361 }
0x20c0   :  { %v2366_v54 = vadd.f32 %v2362_v52, %v2346_v51  ;;  %v2360_v55 = vpop.permute.xlu0 %2359 }
0x20c1   :  { %v2365_v57 = vadd.f32 %v2360_v55, %v2345_v53 }
0x20c2   :  { %4201 = vtanh.f32 %v2366_v54 }
0x20c3   :  { %4203 = vtanh.f32 %v2365_v57 }
0x20cc   :  { %v4202_v58 = vpop.eup %4201 }
0x20cd   :  { %v4204_v60 = vpop.eup %4203  ;;  %2373 = vrot.lane.b32.xlu1 %v4202_v58, %s4290_s0 }
0x20ce   :  { %2371 = vrot.lane.b32.xlu0 %v4204_v60, %s4290_s0 }
0x213f   :  { %v2374_v61 = vpop.permute.xlu1 %2373 }
0x2140   :  { %v2378_v62 = vmul.f32 %v4198_v45, %v2374_v61  ;;  %v2372_v63 = vpop.permute.xlu0 %2371 }
0x2141   :  { %v2377_v0 = vmul.f32 %v4200_v48, %v2372_v63 }
0x2142   :  { %2383 = vrot.lane.b32.xlu1 %v2378_v62, %s4291_s17 }
0x2143   :  { %2381 = vrot.lane.b32.xlu0 %v2377_v0, %s4291_s17 }
0x21b4   :  { %v2384_v2 = vpop.permute.xlu1 %2383 }
0x21b5   :  { %v2382_v1 = vpop.permute.xlu0 %2381 }
0x21b6   :  { %3692 = vmatprep.mubr.msk.f32.mxu1 %vm64_vm0, %v2382_v1 }
0x21b7   :  { %3693 = vmatmul.mubr.msk.f32.vlgmr.msra.gmra.mrb[14].mxu1 %vm64_vm0, %v2384_v2 }
0x21b8   :  { %3902 = vmatpush3.bf16.msra.mxu1 %v4691_v17 }
0x21b9   :  { %3904 = vmatprep.subr.bf16.mxu1 %v4700_v20 }
0x21bc   :  { %3906 = vmatpush3.bf16.msra.mxu1 %v4700_v20 }
0x21bd   :  { %3908 = vmatprep.subr.bf16.mxu1 %v4691_v17 }
0x228a   :  { %v3694_v3 = vpop.f32.mrb[14].mxu1 }
0x228b   :  { %v3965_v5 = vadd.f32 %v3694_v3, %v4737_v42  ;;  %v2455_v6 = vpop.f32.mrb[15].mxu1 }
0x228c   :  { %v3966_v7 = vadd.f32 %v4737_v42, %v2455_v6 }
0x228d   :  { %4205 = vtanh.f32 %v3965_v5  ;;  %v3271_v11 = vmul.f32 -1.442695, %v3965_v5 }
0x228e   :  { %4207 = vtanh.f32 %v3966_v7  ;;  %v3270_v12 = vmul.f32 -1.442695, %v3966_v7 }
0x228f   :  { %4209 = vpow2.f32 %v3271_v11 }
0x2290   :  { %4211 = vpow2.f32 %v3270_v12 }
0x2297   :  { %v4206_v8 = vpop.eup %4205 }
0x2298   :  { %v4208_v10 = vpop.eup %4207  ;;  %2486 = vrot.lane.b32.xlu1 %v4206_v8, %s4290_s0 }
0x2299   :  { %2484 = vrot.lane.b32.xlu0 %v4208_v10, %s4290_s0  ;;  %v4210_v13 = vpop.eup %4209 }
0x229a   :  { %v4212_v15 = vpop.eup %4211  ;;  %v2473_v16 = vadd.f32 1.0, %v4210_v13 }
0x229b   :  { %v2472_v18 = vadd.f32 1.0, %v4212_v15 }
0x229c   :  { %4213 = vrcp.f32 %v2473_v16 }
0x229d   :  { %4215 = vrcp.f32 %v2472_v18 }
0x22a6   :  { %v4214_v19 = vpop.eup %4213 }
0x22a7   :  { %v4216_v22 = vpop.eup %4215  ;;  %v2481_v25 = vmul.f32 %v4214_v19, %v2366_v54 }
0x22a8   :  { %v2480_v27 = vmul.f32 %v4216_v22, %v2365_v57 }
0x230a   :  { %v2487_v21 = vpop.permute.xlu1 %2486 }
0x230b   :  { %v2491_v29 = vmul.f32 %v4214_v19, %v2487_v21  ;;  %v2485_v23 = vpop.permute.xlu0 %2484 }
0x230c   :  { %v2490_v24 = vmul.f32 %v4216_v22, %v2485_v23 }
0x230d   :  { %2496 = vrot.lane.b32.xlu1 %v2491_v29, %s4291_s17 }
0x230e   :  { %2494 = vrot.lane.b32.xlu0 %v2490_v24, %s4291_s17 }
0x237f   :  { %v2497_v26 = vpop.permute.xlu1 %2496 }
0x2380   :  { %v2501_v30 = vadd.f32 %v2497_v26, %v2481_v25  ;;  %v2495_v31 = vpop.permute.xlu0 %2494 }
0x2381   :  { %v2500_v33 = vadd.f32 %v2495_v31, %v2480_v27 }
0x2382   :  { %4217 = vtanh.f32 %v2501_v30 }
0x2383   :  { %4219 = vtanh.f32 %v2500_v33 }
0x238c   :  { %v4218_v34 = vpop.eup %4217 }
0x238d   :  { %v4220_v35 = vpop.eup %4219  ;;  %2508 = vrot.lane.b32.xlu1 %v4218_v34, %s4290_s0 }
0x238e   :  { %2506 = vrot.lane.b32.xlu0 %v4220_v35, %s4290_s0 }
0x23ff   :  { %v2509_v36 = vpop.permute.xlu1 %2508 }
0x2400   :  { %v2513_v37 = vmul.f32 %v4214_v19, %v2509_v36  ;;  %v2507_v39 = vpop.permute.xlu0 %2506 }
0x2401   :  { %v2512_v40 = vmul.f32 %v4216_v22, %v2507_v39 }
0x2402   :  { %2518 = vrot.lane.b32.xlu1 %v2513_v37, %s4291_s17 }
0x2403   :  { %2516 = vrot.lane.b32.xlu0 %v2512_v40, %s4291_s17 }
0x2474   :  { %v2519_v43 = vpop.permute.xlu1 %2518 }
0x2475   :  { %v2517_v41 = vpop.permute.xlu0 %2516 }
0x2476   :  { %3703 = vmatprep.mubr.msk.f32.mxu1 %vm64_vm0, %v2517_v41 }
0x2477   :  { %3704 = vmatmul.mubr.msk.f32.vlgmr.msra.gmra.mrb[16].mxu1 %vm64_vm0, %v2519_v43 }
0x2478   :  { %3910 = vmatpush3.bf16.msra.mxu1 %v4691_v17 }
0x2479   :  { %3912 = vmatprep.subr.bf16.mxu1 %v4700_v20 }
0x247c   :  { %3914 = vmatpush3.bf16.msra.mxu1 %v4700_v20 }
0x247d   :  { %3916 = vmatprep.subr.bf16.mxu1 %v4691_v17 }
0x254a   :  { %v3705_v44 = vpop.f32.mrb[16].mxu1 }
0x254b   :  { %v3967_v45 = vadd.f32 %v3705_v44, %v4737_v42  ;;  %v2590_v47 = vpop.f32.mrb[17].mxu1 }
0x254c   :  { %v3968_v48 = vadd.f32 %v4737_v42, %v2590_v47 }
0x254d   :  { %4221 = vtanh.f32 %v3967_v45  ;;  %v3275_v50 = vmul.f32 -1.442695, %v3967_v45 }
0x254e   :  { %4223 = vtanh.f32 %v3968_v48  ;;  %v3274_v51 = vmul.f32 -1.442695, %v3968_v48 }
0x254f   :  { %4225 = vpow2.f32 %v3275_v50 }
0x2550   :  { %4227 = vpow2.f32 %v3274_v51 }
0x2557   :  { %v4222_v9 = vpop.eup %4221 }
0x2558   :  { %v4224_v14 = vpop.eup %4223  ;;  %2621 = vrot.lane.b32.xlu1 %v4222_v9, %s4290_s0 }
0x2559   :  { %2619 = vrot.lane.b32.xlu0 %v4224_v14, %s4290_s0  ;;  %v4226_v52 = vpop.eup %4225 }
0x255a   :  { %v4228_v53 = vpop.eup %4227  ;;  %v2608_v54 = vadd.f32 1.0, %v4226_v52 }
0x255b   :  { %v2607_v55 = vadd.f32 1.0, %v4228_v53 }
0x255c   :  { %4229 = vrcp.f32 %v2608_v54 }
0x255d   :  { %4231 = vrcp.f32 %v2607_v55 }
0x2566   :  { %v4230_v57 = vpop.eup %4229 }
0x2567   :  { %v4232_v60 = vpop.eup %4231  ;;  %v2616_v0 = vmul.f32 %v4230_v57, %v2501_v30 }
0x2568   :  { %v2615_v2 = vmul.f32 %v4232_v60, %v2500_v33 }
0x25ca   :  { %v2622_v58 = vpop.permute.xlu1 %2621 }
0x25cb   :  { %v2626_v61 = vmul.f32 %v4230_v57, %v2622_v58  ;;  %v2620_v62 = vpop.permute.xlu0 %2619 }
0x25cc   :  { %v2625_v63 = vmul.f32 %v4232_v60, %v2620_v62 }
0x25cd   :  { %2631 = vrot.lane.b32.xlu1 %v2626_v61, %s4291_s17 }
0x25ce   :  { %2629 = vrot.lane.b32.xlu0 %v2625_v63, %s4291_s17 }
0x263f   :  { %v2632_v1 = vpop.permute.xlu1 %2631 }
0x2640   :  { %v2636_v3 = vadd.f32 %v2632_v1, %v2616_v0  ;;  %v2630_v5 = vpop.permute.xlu0 %2629 }
0x2641   :  { %v2635_v6 = vadd.f32 %v2630_v5, %v2615_v2 }
0x2642   :  { %4233 = vtanh.f32 %v2636_v3 }
0x2643   :  { %4235 = vtanh.f32 %v2635_v6 }
0x264c   :  { %v4234_v7 = vpop.eup %4233 }
0x264d   :  { %v4236_v8 = vpop.eup %4235  ;;  %2643 = vrot.lane.b32.xlu1 %v4234_v7, %s4290_s0 }
0x264e   :  { %2641 = vrot.lane.b32.xlu0 %v4236_v8, %s4290_s0 }
0x26bf   :  { %v2644_v10 = vpop.permute.xlu1 %2643 }
0x26c0   :  { %v2648_v11 = vmul.f32 %v4230_v57, %v2644_v10  ;;  %v2642_v12 = vpop.permute.xlu0 %2641 }
0x26c1   :  { %v2647_v13 = vmul.f32 %v4232_v60, %v2642_v12 }
0x26c2   :  { %2653 = vrot.lane.b32.xlu1 %v2648_v11, %s4291_s17 }
0x26c3   :  { %2651 = vrot.lane.b32.xlu0 %v2647_v13, %s4291_s17 }
0x2734   :  { %v2654_v16 = vpop.permute.xlu1 %2653 }
0x2735   :  { %v2652_v15 = vpop.permute.xlu0 %2651 }
0x2736   :  { %3714 = vmatprep.mubr.msk.f32.mxu1 %vm64_vm0, %v2652_v15 }
0x2737   :  { %3715 = vmatmul.mubr.msk.f32.vlgmr.msra.gmra.mrb[18].mxu1 %vm64_vm0, %v2654_v16 }
0x2738   :  { %3918 = vmatpush3.bf16.msra.mxu1 %v4691_v17 }
0x2739   :  { %3920 = vmatprep.subr.bf16.mxu1 %v4700_v20 }
0x273c   :  { %3922 = vmatpush3.bf16.msra.mxu1 %v4700_v20 }
0x280a   :  { %v3716_v18 = vpop.f32.mrb[18].mxu1 }
0x280b   :  { %v3969_v19 = vadd.f32 %v3716_v18, %v4737_v42  ;;  %v2725_v21 = vpop.f32.mrb[19].mxu1 }
0x280c   :  { %v3970_v22 = vadd.f32 %v4737_v42, %v2725_v21 }
0x280d   :  { %4237 = vtanh.f32 %v3969_v19  ;;  %v3279_v24 = vmul.f32 -1.442695, %v3969_v19 }
0x280e   :  { %4239 = vtanh.f32 %v3970_v22  ;;  %v3278_v17 = vmul.f32 -1.442695, %v3970_v22 }
0x280f   :  { %4241 = vpow2.f32 %v3279_v24 }
0x2810   :  { %4243 = vpow2.f32 %v3278_v17 }
0x2817   :  { %v4238_v29 = vpop.eup %4237 }
0x2818   :  { %v4240_v23 = vpop.eup %4239  ;;  %2756 = vrot.lane.b32.xlu1 %v4238_v29, %s4290_s0 }
0x2819   :  { %2754 = vrot.lane.b32.xlu0 %v4240_v23, %s4290_s0  ;;  %v4242_v25 = vpop.eup %4241 }
0x281a   :  { %v4244_v20 = vpop.eup %4243  ;;  %v2743_v26 = vadd.f32 1.0, %v4242_v25 }
0x281b   :  { %v2742_v27 = vadd.f32 1.0, %v4244_v20 }
0x281c   :  { %4245 = vrcp.f32 %v2743_v26 }
0x281d   :  { %4247 = vrcp.f32 %v2742_v27 }
0x2826   :  { %v4246_v30 = vpop.eup %4245 }
0x2827   :  { %v4248_v33 = vpop.eup %4247  ;;  %v2751_v37 = vmul.f32 %v4246_v30, %v2636_v3 }
0x2828   :  { %v2750_v40 = vmul.f32 %v4248_v33, %v2635_v6 }
0x288a   :  { %v2757_v31 = vpop.permute.xlu1 %2756 }
0x288b   :  { %v2761_v34 = vmul.f32 %v4246_v30, %v2757_v31  ;;  %v2755_v35 = vpop.permute.xlu0 %2754 }
0x288c   :  { %v2760_v36 = vmul.f32 %v4248_v33, %v2755_v35 }
0x288d   :  { %2766 = vrot.lane.b32.xlu1 %v2761_v34, %s4291_s17 }
0x288e   :  { %2764 = vrot.lane.b32.xlu0 %v2760_v36, %s4291_s17 }
0x28ff   :  { %v2767_v39 = vpop.permute.xlu1 %2766 }
0x2900   :  { %v2771_v41 = vadd.f32 %v2767_v39, %v2751_v37  ;;  %v2765_v43 = vpop.permute.xlu0 %2764 }
0x2901   :  { %v2770_v44 = vadd.f32 %v2765_v43, %v2750_v40 }
0x2902   :  { %4249 = vtanh.f32 %v2771_v41 }
0x2903   :  { %4251 = vtanh.f32 %v2770_v44 }
0x290c   :  { %v4250_v45 = vpop.eup %4249 }
0x290d   :  { %v4252_v47 = vpop.eup %4251  ;;  %2778 = vrot.lane.b32.xlu1 %v4250_v45, %s4290_s0 }
0x290e   :  { %2776 = vrot.lane.b32.xlu0 %v4252_v47, %s4290_s0 }
0x297f   :  { %v2779_v48 = vpop.permute.xlu1 %2778 }
0x2980   :  { %v2783_v9 = vmul.f32 %v4246_v30, %v2779_v48  ;;  %v2777_v14 = vpop.permute.xlu0 %2776 }
0x2981   :  { %v2782_v50 = vmul.f32 %v4248_v33, %v2777_v14 }
0x2982   :  { %2788 = vrot.lane.b32.xlu1 %v2783_v9, %s4291_s17 }
0x2983   :  { %2786 = vrot.lane.b32.xlu0 %v2782_v50, %s4291_s17 }
0x29f4   :  { %v2789_v52 = vpop.permute.xlu1 %2788 }
0x29f5   :  { %v2787_v51 = vpop.permute.xlu0 %2786 }
0x29f6   :  { %3725 = vmatprep.mubr.msk.f32.mxu1 %vm64_vm0, %v2787_v51 }
0x29f7   :  { %3726 = vmatmul.mubr.msk.f32.vlgmr.msra.gmra.mrb[20].mxu1 %vm64_vm0, %v2789_v52 }
0x2aca   :  { %v3727_v53 = vpop.f32.mrb[20].mxu1 }
0x2acb   :  { %v3971_v54 = vadd.f32 %v3727_v53, %v4737_v42  ;;  %v2860_v55 = vpop.f32.mrb[21].mxu1 }
0x2acc   :  { %v3972_v57 = vadd.f32 %v4737_v42, %v2860_v55 }
0x2acd   :  { %4253 = vtanh.f32 %v3971_v54  ;;  %v3283_v61 = vmul.f32 -1.442695, %v3971_v54 }
0x2ace   :  { %4255 = vtanh.f32 %v3972_v57  ;;  %v3282_v62 = vmul.f32 -1.442695, %v3972_v57 }
0x2acf   :  { %4257 = vpow2.f32 %v3283_v61 }
0x2ad0   :  { %4259 = vpow2.f32 %v3282_v62 }
0x2ad7   :  { %v4254_v58 = vpop.eup %4253 }
0x2ad8   :  { %v4256_v60 = vpop.eup %4255  ;;  %2891 = vrot.lane.b32.xlu0 %v4254_v58, %s4290_s0 }
0x2ad9   :  { %2889 = vrot.lane.b32.xlu1 %v4256_v60, %s4290_s0  ;;  %v4258_v63 = vpop.eup %4257  ;;  %s4265_s0 = scalar_lea.vmem %s3166_s8, 64 }
0x2ada   :  { %v4260_v0 = vpop.eup %4259  ;;  %v2878_v1 = vadd.f32 1.0, %v4258_v63  ;;  %p4266_p0 = scmp.ne.s32.totalorder %s3166_s8, %s4265_s0  ;;  %p4271_p2 = scmp.lt.s32.totalorder %s4265_s0, %s4265_s0 }
0x2adb   :  { %v2877_v2 = vadd.f32 1.0, %v4260_v0 }
0x2adc   :  { %4261 = vrcp.f32 %v2878_v1  ;;  %p4272_p3 = por %p4271_p2, %p4270_p1 }
0x2add   :  { %4263 = vrcp.f32 %v2877_v2 }
0x2ade   :  { %p4273_p4 = pnand %p4272_p3, %p4266_p0 }
0x2ae6   :  { %v4262_v3 = vpop.eup %4261 }
0x2ae7   :  { %v4264_v5 = vpop.eup %4263  ;;  %v2886_v10 = vmul.f32 %v4262_v3, %v2771_v41 }
0x2ae8   :  { %v2885_v12 = vmul.f32 %v4264_v5, %v2770_v44 }
0x2b4a   :  { %v2892_v42 = vpop.permute.xlu0 %2891 }
0x2b4b   :  { %v2896_v6 = vmul.f32 %v4262_v3, %v2892_v42  ;;  %v2890_v7 = vpop.permute.xlu1 %2889 }
0x2b4c   :  { %v2895_v8 = vmul.f32 %v4264_v5, %v2890_v7 }
0x2b4d   :  { %2901 = vrot.lane.b32.xlu0 %v2896_v6, %s4291_s17 }
0x2b4e   :  { %2899 = vrot.lane.b32.xlu1 %v2895_v8, %s4291_s17 }
0x2bbf   :  { %v2902_v11 = vpop.permute.xlu0 %2901 }
0x2bc0   :  { %v2906_v13 = vadd.f32 %v2902_v11, %v2886_v10  ;;  %v2900_v15 = vpop.permute.xlu1 %2899 }
0x2bc1   :  { %v2905_v16 = vadd.f32 %v2900_v15, %v2885_v12 }
0x2bc2   :  { %2916 = vrot.lane.b32.xlu0 %v2906_v13, %s4294_s5 }
0x2bc3   :  { %2991 = vrot.lane.b32.xlu1 %v2905_v16, %s4294_s5 }
0x2c34   :  { %v2917_v18 = vpop.permute.xlu0 %2916 }
0x2c35   :  { %3737 = vmatmul.mubr.msk.f32.vlgmr.msra.gmra.mrb[16].mxu0 %vm64_vm0, %v2917_v18  ;;  %v2992_v19 = vpop.permute.xlu1 %2991 }
0x2c36   :  { %3931 = vmatpush3.bf16.msra.mxu0 %v4622_v46  ;;  %3747 = vmatprep.mubr.msk.f32.mxu0 %vm4293_vm1, %v4289_v28 }
0x2c37   :  { %3932 = vmatprep.subr.bf16.mxu0 %v4292_v32 }
0x2c3a   :  { %3934 = vmatpush3.bf16.msra.mxu0 %v4632_v49 }
0x2c3b   :  { %3935 = vmatprep.subr.bf16.mxu0 %v4292_v32 }
0x2c3d   :  { %3748 = vmatmul.mubr.msk.f32.vlgmr.msra.gmra.mrb[18].mxu0 %vm64_vm0, %v2992_v19 }
0x2c3e   :  { %3937 = vmatpush3.bf16.msra.mxu0 %v4650_v56  ;;  %3758 = vmatprep.mubr.msk.f32.mxu0 %vm4293_vm1, %v4289_v28 }
0x2c3f   :  { %3938 = vmatprep.subr.bf16.mxu0 %v4292_v32 }
0x2c42   :  { %3940 = vmatpush3.bf16.msra.mxu0 %v4660_v59 }
0x2d08   :  { %v2986_v46 = vpop.f32.mrb[16].mxu0 }
0x2d09   :  { %v3738_v21 = vpop.f32.mrb[17].mxu0 }
0x2d10   :  { %v3061_v22 = vpop.f32.mrb[18].mxu0 }
0x2d11   :  { %v3062_v29 = vadd.f32 %v3061_v22, %v2986_v46  ;;  %v3749_v23 = vpop.f32.mrb[19].mxu0 }
0x2d13   :  { %v3072_v49 = vadd.f32 %v4674_v4, %v3062_v29 }
0x2d15   :  { %v3073_v24 = vmax.f32 %v3072_v49, 0.0 }
0x2d17   :  { %3759 = vmatmul.mubr.msk.f32.vlgmr.msra.gmra.mrb[20].mxu0 %vm64_vm0, %v3073_v24 }
0x2dea   :  { %v3154_v56 = vpop.f32.mrb[20].mxu0 }
0x2deb   :  { %v3155_v17 = vadd.f32 %v4730_v38, %v3154_v56  ;;  %v3760_v28 = vpop.f32.mrb[21].mxu0 }
0x2ded   :  { %3159 = vst.msk [vmem:[#allocation3 + $0x2] sm:$0x3] %vm1620_vm2, %v3155_v17 }
0x2dee   :  { %4276 = shalt.err (!%p4273_p4)
}
0x2def   :  { %s4277_s19 = scalar_lea.hbm %s4894_s9, 64 }
0x2df0   :  { %p4278_p5 = scmp.ne.s32.totalorder %s4894_s9, %s4277_s19  ;;  %p4281_p6 = scmp.lt.u32.totalorder %s4277_s19, %s4894_s9 }
0x2df2   :  { %p4283_p7 = pnand %p4281_p6, %p4278_p5 }
0x2df4   :  { %4286 = shalt.err (!%p4283_p7)
}
0x2df5   :  { %s4296_s24 = smov 2  }
0x2df6   :  { %3171 = dma.vmem_to_hbm [thread:$0]  %s3166_s8, 64, %s4894_s9, [#allocation4], %s4291_s17, %s4291_s17, %s4296_s24  }
0x2df7   :  { %4287 = dma.done.wait [#allocation4], 64  }
0x2df8   :  { %4288 = vsyncadd [#allocation4], 4294967232 }
0x2df9   :  { %3175 = vsyncpa [#allocation4], 1 }

</bundles_post_ra>
